<compile_context>
chip_gen: v7x
topology: tpu7x:2x2x1
jax: 0.10.0
libtpu: 0.0.40
codegen_flags: <defaults>
</compile_context>

<pallas_src>
import math

import numpy as np
import jax
import jax.numpy as jnp
from jax import lax
from jax.experimental import pallas as pl
from jax.experimental.pallas import tpu as pltpu

# ----------------------------- static configuration -----------------------------
BATCH = 2
NUM_CAMS = 6
CAMERA_ORDER = [0, 1, 5, 3, 4, 2]
IMG_W, IMG_H = 32, 24                      # small synthetic image size (W, H)
WINDOW_SHAPE = (8, 8)                      # (win_x, win_y); 2-D windows
WIN_X, WIN_Y = WINDOW_SHAPE
SPARSE_SHAPE = (NUM_CAMS * IMG_W, 32, 1)   # (x, y, z) of the fused image coordinate grid
WIN_Z = SPARSE_SHAPE[2]                    # window_shape has len 2 -> win_z == sparse_z
MAX_NUM_WIN_X = int(math.ceil(SPARSE_SHAPE[0] / WIN_X)) + 1
MAX_NUM_WIN_Y = int(math.ceil(SPARSE_SHAPE[1] / WIN_Y)) + 1
MAX_NUM_WIN_Z = int(math.ceil(SPARSE_SHAPE[2] / WIN_Z)) + 1
MAX_WIN_PER_SAMPLE = MAX_NUM_WIN_X * MAX_NUM_WIN_Y * MAX_NUM_WIN_Z
NUM_WIN_TOTAL = BATCH * MAX_WIN_PER_SAMPLE
POS_TEMPERATURE = 10000.0
DROP_INFO = {
    0: dict(max_tokens=8,  drop_range=(0, 8)),
    1: dict(max_tokens=16, drop_range=(8, 100000)),
}

NUM_PAIRS = BATCH * NUM_CAMS               # 12 (batch, camera) projection pairs
GROUP = ((NUM_PAIRS + 7) // 8) * 8         # sublane-aligned group stride (16)
PROJ_ROWS = 3 * GROUP                      # u-rows / v-rows / w-rows groups -> 48
MAX_TOKEN_BLOCK = 1024                     # tokens per grid step (lane axis)


def _round_up(x, m):
    return (x + m - 1) // m * m


def _pick_tn(n):
    return min(MAX_TOKEN_BLOCK, _round_up(max(n, 1), 128))


def _div_mod(val, d):
    """Integer div/mod by a static positive constant (shift/mask when power of two)."""
    if d == 1:
        return val, jnp.zeros_like(val)
    if d & (d - 1) == 0:
        sh = d.bit_length() - 1
        return val >> sh, val & (d - 1)
    return val // d, val % d     # generic path (non power-of-two window shapes)


# =================================================================================
# Pallas kernel A: project voxel means into the fused multi-camera image plane
# =================================================================================
def _proj2d_kernel(proj_ref, pts_ref, vc_ref, out_ref):
    # proj_ref : VMEM f32 [PROJ_ROWS, 8]
    #            rows [0:12]  = u-rows of the 3x4 lidar2img matrices (b-major, CAMERA_ORDER)
    #            rows [16:28] = v-rows, rows [32:44] = w-rows (cols 0..3 = coefficients).
    #            cols 4/5 of the u-rows carry metadata (camera pixel offset, batch id); the
    #            matching rows of pts are zero so the matmul is unaffected.
    # pts_ref  : VMEM f32 [8, TN]  homogeneous points: rows [x, y, z, 1, 0, 0, 0, 0]
    # vc_ref   : VMEM i32 [8, TN]  voxel coors [b, z, y, x, 0...] (transposed)
    # out_ref  : VMEM i32 [8, TN]  -> rows [b, 0, v, u + cam*IMG_W, 0, 0, 0, 0]
    pts = pts_ref[...]
    res = jnp.dot(proj_ref[...], pts, preferred_element_type=jnp.float32)   # MXU, (48, TN)

    u_h = res[0:NUM_PAIRS, :]
    v_h = res[GROUP:GROUP + NUM_PAIRS, :]
    w_h = res[2 * GROUP:2 * GROUP + NUM_PAIRS, :]

    w = jnp.clip(w_h, 0.0001, 10000.0)
    inv_w = pl.reciprocal(w)                 # exact reciprocal (result truncated to int below)
    u = u_h * inv_w
    v = v_h * inv_w

    # metadata stashed in the packed projection operand
    cam_off = proj_ref[0:NUM_PAIRS, 4:5]     # (12, 1) f32  camera pixel offset
    row_b = proj_ref[0:NUM_PAIRS, 5:6]       # (12, 1) f32  batch id of this row

    b_tok = vc_ref[0:1, :]                   # (1, TN) i32
    b_tok_f = b_tok.astype(jnp.float32)

    # inclusive bounds match the original points_in_image (0 <= u <= W, 0 <= v <= H)
    in_img = (u >= 0.0) & (u <= float(IMG_W)) & (v >= 0.0) & (v <= float(IMG_H))
    mask = in_img & (row_b == b_tok_f)       # (12, TN)

    # "last camera in camera_order wins" (torch overwrite order); batches are disjoint.
    prio = lax.broadcasted_iota(jnp.int32, mask.shape, 0)
    key = jnp.where(mask, prio, -1)
    winner = jnp.max(key, axis=0, keepdims=True)            # (1, TN)
    win_mask = mask & (key == winner)
    sel_u = jnp.sum(jnp.where(win_mask, u + cam_off, 0.0), axis=0, keepdims=True)
    sel_v = jnp.sum(jnp.where(win_mask, v, 0.0), axis=0, keepdims=True)
    # tokens seen by no camera keep (u, v) == (0, 0), as in the torch zeros_like init.

    zeros = jnp.zeros_like(b_tok)
    out_ref[0:1, :] = b_tok
    out_ref[1:2, :] = zeros
    out_ref[2:3, :] = sel_v.astype(jnp.int32)                # trunc toward zero == .int()
    out_ref[3:4, :] = sel_u.astype(jnp.int32)
    out_ref[4:8, :] = jnp.zeros((4, b_tok.shape[1]), jnp.int32)


def _build_proj_packed(lidar2img):
    """Pack the per-(batch, camera) 3x4 projections + metadata into (PROJ_ROWS, 8)."""
    m = lidar2img.astype(jnp.float32)                        # (BATCH, NUM_CAMS, 4, 4)
    rows_u, rows_v, rows_w, cam_off, bid = [], [], [], [], []
    for b in range(BATCH):
        for cam in CAMERA_ORDER:                             # == torch overwrite order
            rows_u.append(m[b, cam, 0])
            rows_v.append(m[b, cam, 1])
            rows_w.append(m[b, cam, 2])
            cam_off.append(float(cam * IMG_W))
            bid.append(float(b))

    def _group(rows, meta0=None, meta1=None):
        g = jnp.stack(rows, axis=0)                          # (12, 4)
        meta = jnp.zeros((NUM_PAIRS, 4), jnp.float32)
        if meta0 is not None:
            meta = meta.at[:, 0].set(jnp.asarray(meta0, jnp.float32))
            meta = meta.at[:, 1].set(jnp.asarray(meta1, jnp.float32))
        g = jnp.concatenate([g, meta], axis=1)               # (12, 8)
        return jnp.pad(g, ((0, GROUP - NUM_PAIRS), (0, 0)))  # (16, 8)

    return jnp.concatenate([_group(rows_u, cam_off, bid),
                            _group(rows_v), _group(rows_w)], axis=0)   # (48, 8)


def proj_voxel_mean_2d(voxel_mean, voxel_coors, lidar2img):
    """Returns transposed fused-image coords (8, Nv) i32: rows [b, 0, v, u_fused, 0...]."""
    nv = voxel_mean.shape[0]
    tn = _pick_tn(nv)
    n_pad = _round_up(nv, tn)

    pts = jnp.concatenate([voxel_mean[:, :3].astype(jnp.float32).T,   # (3, nv)
                           jnp.ones((1, nv), jnp.float32),
                           jnp.zeros((4, nv), jnp.float32)], axis=0)  # (8, nv)
    pts = jnp.pad(pts, ((0, 0), (0, n_pad - nv)))
    vc_t = jnp.pad(voxel_coors.astype(jnp.int32).T, ((0, 4), (0, n_pad - nv)))
    proj_packed = _build_proj_packed(lidar2img)

    out_t = pl.pallas_call(
        _proj2d_kernel,
        out_shape=jax.ShapeDtypeStruct((8, n_pad), jnp.int32),
        grid=(n_pad // tn,),
        in_specs=[pl.BlockSpec((PROJ_ROWS, 8), lambda i: (0, 0)),
                  pl.BlockSpec((8, tn), lambda i: (0, i)),
                  pl.BlockSpec((8, tn), lambda i: (0, i))],
        out_specs=pl.BlockSpec((8, tn), lambda i: (0, i)),
        compiler_params=pltpu.CompilerParams(dimension_semantics=("parallel",)),
    )(proj_packed, pts, vc_t)
    return out_t[:, :nv]


# =================================================================================
# Pallas kernel B: fused window partition (shift0 + shift1) + positional embedding
# =================================================================================
def _win_pos_kernel(fp_ref, coors_ref, win_ref, pos_ref):
    # fp_ref    : VMEM f32 [pos_half_pad, 8]  col0 = 1/inv_freq[j], col1 = phase (0 or pi/2)
    # coors_ref : VMEM i32 [8, TN]  rows [b, z, y, x, 0...]
    # win_ref   : VMEM i32 [8, TN]  rows [bwi0, z0, y0, x0, bwi1, z1, y1, x1]
    # pos_ref   : VMEM f32 [2C, TN] rows [shift0 channels (C) | shift1 channels (C)]
    c = pos_ref.shape[0] // 2
    ph = c // 2                                # pos_length (= feat_dim // ndim, ndim == 2)
    rf = fp_ref[0:ph, 0:1]                     # (ph, 1)
    phase = fp_ref[0:ph, 1:2]                  # (ph, 1)   cos(x) == sin(x + pi/2)

    b = coors_ref[0:1, :]
    z = coors_ref[1:2, :]
    y = coors_ref[2:3, :]
    x = coors_ref[3:4, :]

    for s in range(2):                         # statically unrolled (shift0 / shift1)
        if s == 0:
            sx, sy, sz = WIN_X, WIN_Y, WIN_Z
        else:
            sx, sy, sz = WIN_X // 2, WIN_Y // 2, WIN_Z // 2
        if SPARSE_SHAPE[2] == WIN_Z:
            sz = 0                             # 2D-window compatibility (as in get_window_coors)

        shx = x + sx
        shy = y + sy
        shz = z + sz
        wx, cx = _div_mod(shx, WIN_X)
        wy, cy = _div_mod(shy, WIN_Y)
        wz, cz = _div_mod(shz, WIN_Z)
        bwi = (b * MAX_WIN_PER_SAMPLE
               + wx * (MAX_NUM_WIN_Y * MAX_NUM_WIN_Z)
               + wy * MAX_NUM_WIN_Z
               + wz)

        base = 4 * s
        win_ref[base + 0:base + 1, :] = bwi
        win_ref[base + 1:base + 2, :] = cz
        win_ref[base + 2:base + 3, :] = cy
        win_ref[base + 3:base + 4, :] = cx

        # sinusoidal embedding for this shift: one sin per output element, no divides.
        xf = cx.astype(jnp.float32) - (WIN_X / 2.0)          # (1, TN)
        yf = cy.astype(jnp.float32) - (WIN_Y / 2.0)
        pbase = s * c
        pos_ref[pbase:pbase + ph, :] = jnp.sin(xf * rf + phase)       # embed_x
        pos_ref[pbase + ph:pbase + c, :] = jnp.sin(yf * rf + phase)   # embed_y


def _build_freq_phase(feat_dim):
    ph = feat_dim // 2
    j = np.arange(ph)
    inv_freq = POS_TEMPERATURE ** (2 * (j // 2) / ph)
    ph_pad = _round_up(ph, 8)
    out = np.zeros((ph_pad, 8), np.float32)
    out[:ph, 0] = (1.0 / inv_freq).astype(np.float32)        # precomputed reciprocal
    out[:ph, 1] = np.where(j % 2 == 0, 0.0, np.pi / 2).astype(np.float32)
    return jnp.asarray(out)


def fused_window_partition_pos(sst_coors_t, feat_dim):
    """sst_coors_t: (8, N) i32.  Returns win_t (8, N) i32, pos_t (2*feat_dim, N) f32."""
    n = sst_coors_t.shape[1]
    tn = _pick_tn(n)
    n_pad = _round_up(n, tn)
    coors_p = jnp.pad(sst_coors_t, ((0, 0), (0, n_pad - n)))
    fp = _build_freq_phase(feat_dim)
    ph_pad = fp.shape[0]

    win_t, pos_t = pl.pallas_call(
        _win_pos_kernel,
        out_shape=(jax.ShapeDtypeStruct((8, n_pad), jnp.int32),
                   jax.ShapeDtypeStruct((2 * feat_dim, n_pad), jnp.float32)),
        grid=(n_pad // tn,),
        in_specs=[pl.BlockSpec((ph_pad, 8), lambda i: (0, 0)),
                  pl.BlockSpec((8, tn), lambda i: (0, i))],
        out_specs=(pl.BlockSpec((8, tn), lambda i: (0, i)),
                   pl.BlockSpec((2 * feat_dim, tn), lambda i: (0, i))),
        compiler_params=pltpu.CompilerParams(dimension_semantics=("parallel",)),
    )(fp, coors_p)
    return win_t[:, :n], pos_t[:, :n]


# =================================================================================
# Plain-JAX glue: inner window index, region batching / drop, flat->window scatter
# =================================================================================
def get_inner_win_inds_jax(bwi, valid):
    n = bwi.shape[0]
    key = jnp.where(valid, bwi, jnp.int32(NUM_WIN_TOTAL + 1))
    order = jnp.argsort(key)                                  # stable
    sorted_key = key[order]
    idx = jnp.arange(n, dtype=jnp.int32)
    is_start = jnp.concatenate([jnp.array([True]), sorted_key[1:] != sorted_key[:-1]])
    start = jnp.where(is_start, idx, 0)
    start = lax.cummax(start, axis=0)
    inner_sorted = idx - start
    return jnp.zeros(n, jnp.int32).at[order].set(inner_sorted)


def drop_single_shift_jax(bwi, valid):
    n = bwi.shape[0]
    inner = get_inner_win_inds_jax(bwi, valid)
    scatter_idx = jnp.where(valid, bwi, NUM_WIN_TOTAL)        # OOB -> dropped
    counts = jnp.zeros(NUM_WIN_TOTAL, jnp.int32).at[scatter_idx].add(
        jnp.ones(n, jnp.int32), mode="drop")
    num_per_voxel = counts[jnp.clip(bwi, 0, NUM_WIN_TOTAL - 1)]
    target = jnp.zeros_like(bwi)
    drop_lvl = -jnp.ones_like(bwi)
    for dl, info in DROP_INFO.items():
        lower, upper = info["drop_range"]
        rm = (num_per_voxel >= lower) & (num_per_voxel < upper)
        target = jnp.where(rm, info["max_tokens"], target)
        drop_lvl = jnp.where(rm, dl, drop_lvl)
    keep = valid & (inner < target)
    drop_lvl = jnp.where(valid, drop_lvl, -1)
    return keep, drop_lvl


def build_window_outputs(pos, bwi, drop_lvl, keep):
    """Window-scatter of pos embeddings + key padding masks for one shift.

    A single inner-window argsort is shared across drop levels and across the pos/key-mask
    outputs (a window's tokens all share one drop level, so the inner index is unchanged).
    """
    # TODO(synk): window axis is NOT compacted to occupied windows (torch uses
    # make_continuous_inds / unique, which is data-dependent); static bound NUM_WIN_TOTAL.
    n = bwi.shape[0]
    inner = get_inner_win_inds_jax(bwi, keep)
    pos_dict, mask_dict = {}, {}
    for dl, info in DROP_INFO.items():
        t = info["max_tokens"]
        m = keep & (drop_lvl == dl)
        win = jnp.where(m, bwi, NUM_WIN_TOTAL)                # OOB -> dropped by scatter
        slot = jnp.where(m, inner, 0)
        buf = jnp.zeros((NUM_WIN_TOTAL, t, pos.shape[1]), pos.dtype)
        pos_dict[dl] = buf.at[win, slot].set(pos, mode="drop")
        occupied = jnp.zeros((NUM_WIN_TOTAL, t), bool).at[win, slot].set(
            jnp.ones(n, bool), mode="drop")
        mask_dict[dl] = jnp.logical_not(occupied)             # True == padded slot
    return pos_dict, mask_dict


# =================================================================================
# Full forward (mirrors SharedSSTInputLayer.forward, use_image_grouping=True,
# use_fused_input=True, shuffle_voxels=True)
# =================================================================================
def shared_sst_input_layer_forward(voxel_feats, voxel_coors, voxel_mean,
                                   patch_feats, patch_coors, lidar2img,
                                   shuffle_key=None):
    feat_dim = voxel_feats.shape[1]

    # 1. image grouping (Pallas kernel A), coords kept token-on-lane (8, Nv)
    vm2d_t = proj_voxel_mean_2d(voxel_mean, voxel_coors, lidar2img)

    # 2. fuse voxel + patch streams
    np_tokens = patch_feats.shape[0]
    patch_coors_t = jnp.pad(patch_coors.astype(jnp.int32).T, ((0, 4), (0, 0)))
    sst_feats = jnp.concatenate([voxel_feats, patch_feats], axis=0)
    sst_coors_t = jnp.concatenate([vm2d_t, patch_coors_t], axis=1)        # (8, N)
    voxel_coors_full = jnp.concatenate(
        [voxel_coors.astype(jnp.int32), -jnp.ones((np_tokens, 4), jnp.int32)], axis=0)
    n = sst_feats.shape[0]
    original_index = jnp.arange(n, dtype=jnp.int32)

    # 3. shuffle (torch.randperm -> jax.random.permutation)
    if shuffle_key is not None:
        perm = jax.random.permutation(shuffle_key, n)
        sst_feats = sst_feats[perm]
        sst_coors_t = sst_coors_t[:, perm]
        voxel_coors_full = voxel_coors_full[perm]
        original_index = original_index[perm]

    # 4. fused window partition + pos embed for both shifts (Pallas kernel B)
    win_t, pos_t = fused_window_partition_pos(sst_coors_t, feat_dim)
    bwi0, ciw0 = win_t[0], win_t[1:4].T
    bwi1, ciw1 = win_t[4], win_t[5:8].T
    pos0 = pos_t[:feat_dim].T
    pos1 = pos_t[feat_dim:].T

    # 5. region batching / drop (glue)
    # TODO(synk): dropped tokens are masked (keep_mask), not physically compacted —
    # boolean-mask gather produces dynamic shapes which are unsupported on TPU.
    keep0, lvl0 = drop_single_shift_jax(bwi0, jnp.ones(n, bool))
    keep1, lvl1 = drop_single_shift_jax(bwi1, keep0)
    keep = keep1
    lvl0 = jnp.where(keep, lvl0, -1)
    lvl1 = jnp.where(keep, lvl1, -1)

    sst_info = {
        "sst_feats": sst_feats,
        "sst_coors": sst_coors_t[:4].T,
        "voxel_coors": voxel_coors_full,
        "original_index": original_index,
        "keep_mask": keep,
    }
    for i, (bwi, ciw, lvl, pos) in enumerate(
            [(bwi0, ciw0, lvl0, pos0), (bwi1, ciw1, lvl1, pos1)]):
        pos_dict, key_mask = build_window_outputs(pos, bwi, lvl, keep)
        sst_info[f"batch_win_inds_shift{i}"] = bwi
        sst_info[f"coors_in_win_shift{i}"] = ciw
        sst_info[f"sst_drop_level_shift{i}"] = lvl
        sst_info[f"pos_dict_shift{i}"] = pos_dict
        sst_info[f"key_mask_shift{i}"] = key_mask
    return sst_info


# =================================================================================
# main
# =================================================================================
if __name__ == "__main__":
    key = jax.random.PRNGKey(0)
    k1, k2, k3, k4, k5, k6, k7 = jax.random.split(key, 7)

    Nv, Np, C = 64, 64, 32

    # voxel features / coors ([b, z, y, x])
    voxel_feats = jax.random.normal(k1, (Nv, C), jnp.float32)
    voxel_batch = jnp.concatenate(
        [jnp.zeros(Nv // 2, jnp.int32), jnp.ones(Nv // 2, jnp.int32)])
    voxel_coors = jnp.stack(
        [voxel_batch,
         jnp.zeros(Nv, jnp.int32),
         jax.random.randint(k2, (Nv,), 0, IMG_H, jnp.int32),
         jax.random.randint(k3, (Nv,), 0, IMG_W, jnp.int32)], axis=1)

    # voxel means in lidar frame (x, y, z, intensity); kept in front of the cameras
    vm_xy = jax.random.uniform(k4, (Nv, 2), jnp.float32, minval=-2.0, maxval=2.0)
    vm_z = jax.random.uniform(k5, (Nv, 1), jnp.float32, minval=2.0, maxval=6.0)
    voxel_mean = jnp.concatenate(
        [vm_xy, vm_z, jnp.ones((Nv, 1), jnp.float32)], axis=1)

    # patch features / coors ([b, 0, y, x]) already in fused multi-camera pixel space
    patch_feats = jax.random.normal(k6, (Np, C), jnp.float32)
    patch_batch = jnp.concatenate(
        [jnp.zeros(Np // 2, jnp.int32), jnp.ones(Np // 2, jnp.int32)])
    pk1, pk2 = jax.random.split(k7)
    patch_coors = jnp.stack(
        [patch_batch,
         jnp.zeros(Np, jnp.int32),
         jax.random.randint(pk1, (Np,), 0, IMG_H, jnp.int32),
         jax.random.randint(pk2, (Np,), 0, NUM_CAMS * IMG_W, jnp.int32)], axis=1)

    # deterministic synthetic lidar2img projection matrices [B, NUM_CAMS, 4, 4]
    proj = []
    for b in range(BATCH):
        cams = []
        for cam in range(NUM_CAMS):
            fx = fy = 6.0
            cx = IMG_W / 2.0 + 0.3 * cam + 0.1 * b
            cy = IMG_H / 2.0 + 0.2 * cam
            cams.append([[fx, 0.0, cx, 0.0],
                         [0.0, fy, cy, 0.0],
                         [0.0, 0.0, 1.0, 0.0],
                         [0.0, 0.0, 0.0, 1.0]])
        proj.append(cams)
    lidar2img = jnp.asarray(proj, jnp.float32)

    shuffle_key = jax.random.PRNGKey(42)
    forward_fn = jax.jit(shared_sst_input_layer_forward)
    sst_info = forward_fn(voxel_feats, voxel_coors, voxel_mean, patch_feats,
                          patch_coors, lidar2img, shuffle_key)
    sst_info = jax.block_until_ready(sst_info)

    # light sanity checks
    assert sst_info["sst_feats"].shape == (Nv + Np, C)
    assert sst_info["sst_coors"].shape == (Nv + Np, 4)
    assert sst_info["batch_win_inds_shift0"].shape == (Nv + Np,)
    assert sst_info["coors_in_win_shift0"].shape == (Nv + Np, 3)
    assert bool(jnp.all(sst_info["coors_in_win_shift0"][:, 2] < WIN_X))
    for dl, info in DROP_INFO.items():
        buf = sst_info["pos_dict_shift0"][dl]
        assert buf.shape == (NUM_WIN_TOTAL, info["max_tokens"], C)
        assert bool(jnp.all(jnp.isfinite(buf)))
        assert sst_info["key_mask_shift0"][dl].shape == (NUM_WIN_TOTAL, info["max_tokens"])
    assert bool(jnp.any(sst_info["keep_mask"]))

    print("KERNEL_OK")
</pallas_src>

<mosaic_0001>
module attributes {stable_mosaic.version = 11 : i64} {
  func.func private @main(%arg0: i32) attributes {dimension_semantics = [#tpu.dimension_semantics<core_parallel>], iteration_bounds = array<i64: 2>, tpu.core_type = #tpu.core_type<sc_scalar_subcore>, window_params = []} {
    return
  }
}

module attributes {stable_mosaic.version = 11 : i64} {
  func.func private @main(%arg0: i32) attributes {dimension_semantics = [#tpu.dimension_semantics<core_parallel>], iteration_bounds = array<i64: 2>, tpu.core_type = #tpu.core_type<sc_scalar_subcore>, window_params = []} {
    return
  }
}

module attributes {stable_mosaic.version = 11 : i64} {
  func.func @_proj2d_kernel(%arg0: i32, %arg1: memref<48x8xf32, #tpu.memory_space<vmem>>, %arg2: memref<8x128xf32, #tpu.memory_space<vmem>>, %arg3: memref<8x128xi32, #tpu.memory_space<vmem>>, %arg4: memref<8x128xi32, #tpu.memory_space<vmem>>) attributes {dimension_semantics = [#tpu.dimension_semantics<parallel>], iteration_bounds = array<i64: 1>, scalar_prefetch = 0 : i64, scratch_operands = 0 : i64, tpu.core_type = #tpu.core_type<tc>, window_params = [{pipeline_mode = #tpu.pipeline_mode<synchronous>, transform_indices = @transform_0, window_bounds = array<i64: 48, 8>}, {transform_indices = @transform_1, window_bounds = array<i64: 8, 128>}, {transform_indices = @transform_2, window_bounds = array<i64: 8, 128>}, {transform_indices = @transform_3, window_bounds = array<i64: 8, 128>}]} {
    %c0 = arith.constant 0 : index
    %c0_0 = arith.constant 0 : index
    %0 = vector.load %arg2[%c0, %c0_0] : memref<8x128xf32, #tpu.memory_space<vmem>>, vector<8x128xf32>
    %c0_1 = arith.constant 0 : index
    %c0_2 = arith.constant 0 : index
    %1 = vector.load %arg1[%c0_1, %c0_2] : memref<48x8xf32, #tpu.memory_space<vmem>>, vector<48x8xf32>
    %cst = arith.constant dense<0.000000e+00> : vector<48x128xf32>
    %2 = tpu.matmul %1, %0, %cst {dimension_numbers = #tpu.dot_dimension_numbers<[1], [0], [0], [1], [0, 0, 1, 1], [], []>} : vector<48x8xf32>, vector<8x128xf32>, vector<48x128xf32> -> vector<48x128xf32>
    %3 = vector.extract_strided_slice %2 {offsets = [0, 0], sizes = [12, 128], strides = [1, 1]} : vector<48x128xf32> to vector<12x128xf32>
    %4 = vector.extract_strided_slice %2 {offsets = [16, 0], sizes = [12, 128], strides = [1, 1]} : vector<48x128xf32> to vector<12x128xf32>
    %5 = vector.extract_strided_slice %2 {offsets = [32, 0], sizes = [12, 128], strides = [1, 1]} : vector<48x128xf32> to vector<12x128xf32>
    %cst_3 = arith.constant 9.99999974E-5 : f32
    %cst_4 = arith.constant 1.000000e+04 : f32
    %6 = vector.broadcast %cst_3 : f32 to vector<12x128xf32>
    %7 = arith.maximumf %6, %5 : vector<12x128xf32>
    %8 = vector.broadcast %cst_4 : f32 to vector<12x128xf32>
    %9 = arith.minimumf %8, %7 : vector<12x128xf32>
    %10 = tpu.reciprocal %9 : vector<12x128xf32> -> vector<12x128xf32>
    %11 = arith.mulf %3, %10 : vector<12x128xf32>
    %12 = arith.mulf %4, %10 : vector<12x128xf32>
    %c0_5 = arith.constant 0 : index
    %c4 = arith.constant 4 : index
    %13 = vector.load %arg1[%c0_5, %c4] : memref<48x8xf32, #tpu.memory_space<vmem>>, vector<12x1xf32>
    %c0_6 = arith.constant 0 : index
    %c5 = arith.constant 5 : index
    %14 = vector.load %arg1[%c0_6, %c5] : memref<48x8xf32, #tpu.memory_space<vmem>>, vector<12x1xf32>
    %c0_7 = arith.constant 0 : index
    %c0_8 = arith.constant 0 : index
    %15 = vector.load %arg3[%c0_7, %c0_8] : memref<8x128xi32, #tpu.memory_space<vmem>>, vector<1x128xi32>
    %16 = arith.sitofp %15 : vector<1x128xi32> to vector<1x128xf32>
    %cst_9 = arith.constant 0.000000e+00 : f32
    %17 = vector.broadcast %cst_9 : f32 to vector<12x128xf32>
    %18 = arith.cmpf oge, %11, %17 : vector<12x128xf32>
    %cst_10 = arith.constant 3.200000e+01 : f32
    %19 = vector.broadcast %cst_10 : f32 to vector<12x128xf32>
    %20 = arith.cmpf ole, %11, %19 : vector<12x128xf32>
    %21 = arith.andi %18, %20 : vector<12x128xi1>
    %cst_11 = arith.constant 0.000000e+00 : f32
    %22 = vector.broadcast %cst_11 : f32 to vector<12x128xf32>
    %23 = arith.cmpf oge, %12, %22 : vector<12x128xf32>
    %24 = arith.andi %21, %23 : vector<12x128xi1>
    %cst_12 = arith.constant 2.400000e+01 : f32
    %25 = vector.broadcast %cst_12 : f32 to vector<12x128xf32>
    %26 = arith.cmpf ole, %12, %25 : vector<12x128xf32>
    %27 = arith.andi %24, %26 : vector<12x128xi1>
    %28 = vector.broadcast %14 : vector<12x1xf32> to vector<12x128xf32>
    %29 = vector.broadcast %16 : vector<1x128xf32> to vector<12x128xf32>
    %30 = arith.cmpf oeq, %28, %29 : vector<12x128xf32>
    %31 = arith.andi %27, %30 : vector<12x128xi1>
    %32 = tpu.iota {dimensions = array<i32: 0>} : vector<12x128xi32>
    %c-1_i32 = arith.constant -1 : i32
    %33 = vector.broadcast %c-1_i32 : i32 to vector<12x128xi32>
    %34 = arith.select %31, %32, %33 : vector<12x128xi1>, vector<12x128xi32>
    %cst_13 = arith.constant dense<-2147483648> : vector<128xi32>
    %35 = vector.multi_reduction <maxsi>, %34, %cst_13 [0] : vector<12x128xi32> to vector<128xi32>
    %36 = vector.shape_cast %35 : vector<128xi32> to vector<1x128xi32>
    %37 = vector.broadcast %36 : vector<1x128xi32> to vector<12x128xi32>
    %38 = arith.cmpi eq, %34, %37 : vector<12x128xi32>
    %39 = arith.andi %31, %38 : vector<12x128xi1>
    %40 = vector.broadcast %13 : vector<12x1xf32> to vector<12x128xf32>
    %41 = arith.addf %11, %40 : vector<12x128xf32>
    %cst_14 = arith.constant 0.000000e+00 : f32
    %42 = vector.broadcast %cst_14 : f32 to vector<12x128xf32>
    %43 = arith.select %39, %41, %42 : vector<12x128xi1>, vector<12x128xf32>
    %cst_15 = arith.constant dense<0.000000e+00> : vector<128xf32>
    %44 = vector.multi_reduction <add>, %43, %cst_15 [0] : vector<12x128xf32> to vector<128xf32>
    %45 = vector.shape_cast %44 : vector<128xf32> to vector<1x128xf32>
    %cst_16 = arith.constant 0.000000e+00 : f32
    %46 = vector.broadcast %cst_16 : f32 to vector<12x128xf32>
    %47 = arith.select %39, %12, %46 : vector<12x128xi1>, vector<12x128xf32>
    %cst_17 = arith.constant dense<0.000000e+00> : vector<128xf32>
    %48 = vector.multi_reduction <add>, %47, %cst_17 [0] : vector<12x128xf32> to vector<128xf32>
    %49 = vector.shape_cast %48 : vector<128xf32> to vector<1x128xf32>
    %c0_i32 = arith.constant 0 : i32
    %50 = vector.broadcast %c0_i32 : i32 to vector<1x128xi32>
    %c0_18 = arith.constant 0 : index
    %c0_19 = arith.constant 0 : index
    %51 = vector.load %arg4[%c0_18, %c0_19] : memref<8x128xi32, #tpu.memory_space<vmem>>, vector<1x128xi32>
    tpu.vector_store %arg4[%c0_18, %c0_19], %15 {strides = array<i32>} : memref<8x128xi32, #tpu.memory_space<vmem>>, vector<1x128xi32>,
    %c1 = arith.constant 1 : index
    %c0_20 = arith.constant 0 : index
    %52 = vector.load %arg4[%c1, %c0_20] : memref<8x128xi32, #tpu.memory_space<vmem>>, vector<1x128xi32>
    tpu.vector_store %arg4[%c1, %c0_20], %50 {strides = array<i32>} : memref<8x128xi32, #tpu.memory_space<vmem>>, vector<1x128xi32>,
    %53 = arith.fptosi %49 : vector<1x128xf32> to vector<1x128xi32>
    %c2 = arith.constant 2 : index
    %c0_21 = arith.constant 0 : index
    %54 = vector.load %arg4[%c2, %c0_21] : memref<8x128xi32, #tpu.memory_space<vmem>>, vector<1x128xi32>
    tpu.vector_store %arg4[%c2, %c0_21], %53 {strides = array<i32>} : memref<8x128xi32, #tpu.memory_space<vmem>>, vector<1x128xi32>,
    %55 = arith.fptosi %45 : vector<1x128xf32> to vector<1x128xi32>
    %c3 = arith.constant 3 : index
    %c0_22 = arith.constant 0 : index
    %56 = vector.load %arg4[%c3, %c0_22] : memref<8x128xi32, #tpu.memory_space<vmem>>, vector<1x128xi32>
    tpu.vector_store %arg4[%c3, %c0_22], %55 {strides = array<i32>} : memref<8x128xi32, #tpu.memory_space<vmem>>, vector<1x128xi32>,
    %c0_i32_23 = arith.constant 0 : i32
    %57 = vector.broadcast %c0_i32_23 : i32 to vector<4x128xi32>
    %c4_24 = arith.constant 4 : index
    %c0_25 = arith.constant 0 : index
    %58 = vector.load %arg4[%c4_24, %c0_25] : memref<8x128xi32, #tpu.memory_space<vmem>>, vector<4x128xi32>
    tpu.vector_store %arg4[%c4_24, %c0_25], %57 {strides = array<i32>} : memref<8x128xi32, #tpu.memory_space<vmem>>, vector<4x128xi32>,
    return
  }
  func.func @transform_0(%arg0: i32) -> (i32, i32) {
    %c0_i32 = arith.constant 0 : i32
    %c0_i32_0 = arith.constant 0 : i32
    %c0_i32_1 = arith.constant 0 : i32
    return %c0_i32, %c0_i32_0 : i32, i32
  }
  func.func @transform_1(%arg0: i32) -> (i32, i32) {
    %c0_i32 = arith.constant 0 : i32
    %c0_i32_0 = arith.constant 0 : i32
    return %c0_i32, %arg0 : i32, i32
  }
  func.func @transform_2(%arg0: i32) -> (i32, i32) {
    %c0_i32 = arith.constant 0 : i32
    %c0_i32_0 = arith.constant 0 : i32
    return %c0_i32, %arg0 : i32, i32
  }
  func.func @transform_3(%arg0: i32) -> (i32, i32) {
    %c0_i32 = arith.constant 0 : i32
    %c0_i32_0 = arith.constant 0 : i32
    return %c0_i32, %arg0 : i32, i32
  }
}

module attributes {stable_mosaic.version = 11 : i64} {
  func.func @_win_pos_kernel(%arg0: i32, %arg1: memref<16x8xf32, #tpu.memory_space<vmem>>, %arg2: memref<8x128xi32, #tpu.memory_space<vmem>>, %arg3: memref<8x128xi32, #tpu.memory_space<vmem>>, %arg4: memref<64x128xf32, #tpu.memory_space<vmem>>) attributes {dimension_semantics = [#tpu.dimension_semantics<parallel>], iteration_bounds = array<i64: 1>, scalar_prefetch = 0 : i64, scratch_operands = 0 : i64, tpu.core_type = #tpu.core_type<tc>, window_params = [{pipeline_mode = #tpu.pipeline_mode<synchronous>, transform_indices = @transform_0, window_bounds = array<i64: 16, 8>}, {transform_indices = @transform_1, window_bounds = array<i64: 8, 128>}, {transform_indices = @transform_2, window_bounds = array<i64: 8, 128>}, {transform_indices = @transform_3, window_bounds = array<i64: 64, 128>}]} {
    %c0 = arith.constant 0 : index
    %c0_0 = arith.constant 0 : index
    %0 = vector.load %arg1[%c0, %c0_0] : memref<16x8xf32, #tpu.memory_space<vmem>>, vector<16x1xf32>
    %c0_1 = arith.constant 0 : index
    %c1 = arith.constant 1 : index
    %1 = vector.load %arg1[%c0_1, %c1] : memref<16x8xf32, #tpu.memory_space<vmem>>, vector<16x1xf32>
    %c0_2 = arith.constant 0 : index
    %c0_3 = arith.constant 0 : index
    %2 = vector.load %arg2[%c0_2, %c0_3] : memref<8x128xi32, #tpu.memory_space<vmem>>, vector<1x128xi32>
    %c1_4 = arith.constant 1 : index
    %c0_5 = arith.constant 0 : index
    %3 = vector.load %arg2[%c1_4, %c0_5] : memref<8x128xi32, #tpu.memory_space<vmem>>, vector<1x128xi32>
    %c2 = arith.constant 2 : index
    %c0_6 = arith.constant 0 : index
    %4 = vector.load %arg2[%c2, %c0_6] : memref<8x128xi32, #tpu.memory_space<vmem>>, vector<1x128xi32>
    %c3 = arith.constant 3 : index
    %c0_7 = arith.constant 0 : index
    %5 = vector.load %arg2[%c3, %c0_7] : memref<8x128xi32, #tpu.memory_space<vmem>>, vector<1x128xi32>
    %c8_i32 = arith.constant 8 : i32
    %6 = vector.broadcast %c8_i32 : i32 to vector<1x128xi32>
    %7 = arith.addi %5, %6 : vector<1x128xi32>
    %c8_i32_8 = arith.constant 8 : i32
    %8 = vector.broadcast %c8_i32_8 : i32 to vector<1x128xi32>
    %9 = arith.addi %4, %8 : vector<1x128xi32>
    %c0_i32 = arith.constant 0 : i32
    %10 = vector.broadcast %c0_i32 : i32 to vector<1x128xi32>
    %11 = arith.addi %3, %10 : vector<1x128xi32>
    %c3_i32 = arith.constant 3 : i32
    %12 = vector.broadcast %c3_i32 : i32 to vector<1x128xi32>
    %13 = arith.shrsi %7, %12 : vector<1x128xi32>
    %c7_i32 = arith.constant 7 : i32
    %14 = vector.broadcast %c7_i32 : i32 to vector<1x128xi32>
    %15 = arith.andi %7, %14 : vector<1x128xi32>
    %c3_i32_9 = arith.constant 3 : i32
    %16 = vector.broadcast %c3_i32_9 : i32 to vector<1x128xi32>
    %17 = arith.shrsi %9, %16 : vector<1x128xi32>
    %c7_i32_10 = arith.constant 7 : i32
    %18 = vector.broadcast %c7_i32_10 : i32 to vector<1x128xi32>
    %19 = arith.andi %9, %18 : vector<1x128xi32>
    %c0_i32_11 = arith.constant 0 : i32
    %20 = vector.broadcast %c0_i32_11 : i32 to vector<1x128xi32>
    %c250_i32 = arith.constant 250 : i32
    %21 = vector.broadcast %c250_i32 : i32 to vector<1x128xi32>
    %22 = arith.muli %2, %21 : vector<1x128xi32>
    %c10_i32 = arith.constant 10 : i32
    %23 = vector.broadcast %c10_i32 : i32 to vector<1x128xi32>
    %24 = arith.muli %13, %23 : vector<1x128xi32>
    %25 = arith.addi %22, %24 : vector<1x128xi32>
    %c2_i32 = arith.constant 2 : i32
    %26 = vector.broadcast %c2_i32 : i32 to vector<1x128xi32>
    %27 = arith.muli %17, %26 : vector<1x128xi32>
    %28 = arith.addi %25, %27 : vector<1x128xi32>
    %29 = arith.addi %28, %11 : vector<1x128xi32>
    %c0_12 = arith.constant 0 : index
    %c0_13 = arith.constant 0 : index
    %30 = vector.load %arg3[%c0_12, %c0_13] : memref<8x128xi32, #tpu.memory_space<vmem>>, vector<1x128xi32>
    tpu.vector_store %arg3[%c0_12, %c0_13], %29 {strides = array<i32>} : memref<8x128xi32, #tpu.memory_space<vmem>>, vector<1x128xi32>,
    %c1_14 = arith.constant 1 : index
    %c0_15 = arith.constant 0 : index
    %31 = vector.load %arg3[%c1_14, %c0_15] : memref<8x128xi32, #tpu.memory_space<vmem>>, vector<1x128xi32>
    tpu.vector_store %arg3[%c1_14, %c0_15], %20 {strides = array<i32>} : memref<8x128xi32, #tpu.memory_space<vmem>>, vector<1x128xi32>,
    %c2_16 = arith.constant 2 : index
    %c0_17 = arith.constant 0 : index
    %32 = vector.load %arg3[%c2_16, %c0_17] : memref<8x128xi32, #tpu.memory_space<vmem>>, vector<1x128xi32>
    tpu.vector_store %arg3[%c2_16, %c0_17], %19 {strides = array<i32>} : memref<8x128xi32, #tpu.memory_space<vmem>>, vector<1x128xi32>,
    %c3_18 = arith.constant 3 : index
    %c0_19 = arith.constant 0 : index
    %33 = vector.load %arg3[%c3_18, %c0_19] : memref<8x128xi32, #tpu.memory_space<vmem>>, vector<1x128xi32>
    tpu.vector_store %arg3[%c3_18, %c0_19], %15 {strides = array<i32>} : memref<8x128xi32, #tpu.memory_space<vmem>>, vector<1x128xi32>,
    %34 = arith.sitofp %15 : vector<1x128xi32> to vector<1x128xf32>
    %cst = arith.constant 4.000000e+00 : f32
    %35 = vector.broadcast %cst : f32 to vector<1x128xf32>
    %36 = arith.subf %34, %35 : vector<1x128xf32>
    %37 = arith.sitofp %19 : vector<1x128xi32> to vector<1x128xf32>
    %cst_20 = arith.constant 4.000000e+00 : f32
    %38 = vector.broadcast %cst_20 : f32 to vector<1x128xf32>
    %39 = arith.subf %37, %38 : vector<1x128xf32>
    %40 = vector.broadcast %36 : vector<1x128xf32> to vector<16x128xf32>
    %41 = vector.broadcast %0 : vector<16x1xf32> to vector<16x128xf32>
    %42 = arith.mulf %40, %41 : vector<16x128xf32>
    %43 = vector.broadcast %1 : vector<16x1xf32> to vector<16x128xf32>
    %44 = arith.addf %42, %43 : vector<16x128xf32>
    %45 = math.sin %44 : vector<16x128xf32>
    %c0_21 = arith.constant 0 : index
    %c0_22 = arith.constant 0 : index
    %46 = vector.load %arg4[%c0_21, %c0_22] : memref<64x128xf32, #tpu.memory_space<vmem>>, vector<16x128xf32>
    tpu.vector_store %arg4[%c0_21, %c0_22], %45 {strides = array<i32>} : memref<64x128xf32, #tpu.memory_space<vmem>>, vector<16x128xf32>,
    %47 = vector.broadcast %39 : vector<1x128xf32> to vector<16x128xf32>
    %48 = vector.broadcast %0 : vector<16x1xf32> to vector<16x128xf32>
    %49 = arith.mulf %47, %48 : vector<16x128xf32>
    %50 = vector.broadcast %1 : vector<16x1xf32> to vector<16x128xf32>
    %51 = arith.addf %49, %50 : vector<16x128xf32>
    %52 = math.sin %51 : vector<16x128xf32>
    %c16 = arith.constant 16 : index
    %c0_23 = arith.constant 0 : index
    %53 = vector.load %arg4[%c16, %c0_23] : memref<64x128xf32, #tpu.memory_space<vmem>>, vector<16x128xf32>
    tpu.vector_store %arg4[%c16, %c0_23], %52 {strides = array<i32>} : memref<64x128xf32, #tpu.memory_space<vmem>>, vector<16x128xf32>,
    %c4_i32 = arith.constant 4 : i32
    %54 = vector.broadcast %c4_i32 : i32 to vector<1x128xi32>
    %55 = arith.addi %5, %54 : vector<1x128xi32>
    %c4_i32_24 = arith.constant 4 : i32
    %56 = vector.broadcast %c4_i32_24 : i32 to vector<1x128xi32>
    %57 = arith.addi %4, %56 : vector<1x128xi32>
    %c0_i32_25 = arith.constant 0 : i32
    %58 = vector.broadcast %c0_i32_25 : i32 to vector<1x128xi32>
    %59 = arith.addi %3, %58 : vector<1x128xi32>
    %c3_i32_26 = arith.constant 3 : i32
    %60 = vector.broadcast %c3_i32_26 : i32 to vector<1x128xi32>
    %61 = arith.shrsi %55, %60 : vector<1x128xi32>
    %c7_i32_27 = arith.constant 7 : i32
    %62 = vector.broadcast %c7_i32_27 : i32 to vector<1x128xi32>
    %63 = arith.andi %55, %62 : vector<1x128xi32>
    %c3_i32_28 = arith.constant 3 : i32
    %64 = vector.broadcast %c3_i32_28 : i32 to vector<1x128xi32>
    %65 = arith.shrsi %57, %64 : vector<1x128xi32>
    %c7_i32_29 = arith.constant 7 : i32
    %66 = vector.broadcast %c7_i32_29 : i32 to vector<1x128xi32>
    %67 = arith.andi %57, %66 : vector<1x128xi32>
    %c0_i32_30 = arith.constant 0 : i32
    %68 = vector.broadcast %c0_i32_30 : i32 to vector<1x128xi32>
    %c250_i32_31 = arith.constant 250 : i32
    %69 = vector.broadcast %c250_i32_31 : i32 to vector<1x128xi32>
    %70 = arith.muli %2, %69 : vector<1x128xi32>
    %c10_i32_32 = arith.constant 10 : i32
    %71 = vector.broadcast %c10_i32_32 : i32 to vector<1x128xi32>
    %72 = arith.muli %61, %71 : vector<1x128xi32>
    %73 = arith.addi %70, %72 : vector<1x128xi32>
    %c2_i32_33 = arith.constant 2 : i32
    %74 = vector.broadcast %c2_i32_33 : i32 to vector<1x128xi32>
    %75 = arith.muli %65, %74 : vector<1x128xi32>
    %76 = arith.addi %73, %75 : vector<1x128xi32>
    %77 = arith.addi %76, %59 : vector<1x128xi32>
    %c4 = arith.constant 4 : index
    %c0_34 = arith.constant 0 : index
    %78 = vector.load %arg3[%c4, %c0_34] : memref<8x128xi32, #tpu.memory_space<vmem>>, vector<1x128xi32>
    tpu.vector_store %arg3[%c4, %c0_34], %77 {strides = array<i32>} : memref<8x128xi32, #tpu.memory_space<vmem>>, vector<1x128xi32>,
    %c5 = arith.constant 5 : index
    %c0_35 = arith.constant 0 : index
    %79 = vector.load %arg3[%c5, %c0_35] : memref<8x128xi32, #tpu.memory_space<vmem>>, vector<1x128xi32>
    tpu.vector_store %arg3[%c5, %c0_35], %68 {strides = array<i32>} : memref<8x128xi32, #tpu.memory_space<vmem>>, vector<1x128xi32>,
    %c6 = arith.constant 6 : index
    %c0_36 = arith.constant 0 : index
    %80 = vector.load %arg3[%c6, %c0_36] : memref<8x128xi32, #tpu.memory_space<vmem>>, vector<1x128xi32>
    tpu.vector_store %arg3[%c6, %c0_36], %67 {strides = array<i32>} : memref<8x128xi32, #tpu.memory_space<vmem>>, vector<1x128xi32>,
    %c7 = arith.constant 7 : index
    %c0_37 = arith.constant 0 : index
    %81 = vector.load %arg3[%c7, %c0_37] : memref<8x128xi32, #tpu.memory_space<vmem>>, vector<1x128xi32>
    tpu.vector_store %arg3[%c7, %c0_37], %63 {strides = array<i32>} : memref<8x128xi32, #tpu.memory_space<vmem>>, vector<1x128xi32>,
    %82 = arith.sitofp %63 : vector<1x128xi32> to vector<1x128xf32>
    %cst_38 = arith.constant 4.000000e+00 : f32
    %83 = vector.broadcast %cst_38 : f32 to vector<1x128xf32>
    %84 = arith.subf %82, %83 : vector<1x128xf32>
    %85 = arith.sitofp %67 : vector<1x128xi32> to vector<1x128xf32>
    %cst_39 = arith.constant 4.000000e+00 : f32
    %86 = vector.broadcast %cst_39 : f32 to vector<1x128xf32>
    %87 = arith.subf %85, %86 : vector<1x128xf32>
    %88 = vector.broadcast %84 : vector<1x128xf32> to vector<16x128xf32>
    %89 = vector.broadcast %0 : vector<16x1xf32> to vector<16x128xf32>
    %90 = arith.mulf %88, %89 : vector<16x128xf32>
    %91 = vector.broadcast %1 : vector<16x1xf32> to vector<16x128xf32>
    %92 = arith.addf %90, %91 : vector<16x128xf32>
    %93 = math.sin %92 : vector<16x128xf32>
    %c32 = arith.constant 32 : index
    %c0_40 = arith.constant 0 : index
    %94 = vector.load %arg4[%c32, %c0_40] : memref<64x128xf32, #tpu.memory_space<vmem>>, vector<16x128xf32>
    tpu.vector_store %arg4[%c32, %c0_40], %93 {strides = array<i32>} : memref<64x128xf32, #tpu.memory_space<vmem>>, vector<16x128xf32>,
    %95 = vector.broadcast %87 : vector<1x128xf32> to vector<16x128xf32>
    %96 = vector.broadcast %0 : vector<16x1xf32> to vector<16x128xf32>
    %97 = arith.mulf %95, %96 : vector<16x128xf32>
    %98 = vector.broadcast %1 : vector<16x1xf32> to vector<16x128xf32>
    %99 = arith.addf %97, %98 : vector<16x128xf32>
    %100 = math.sin %99 : vector<16x128xf32>
    %c48 = arith.constant 48 : index
    %c0_41 = arith.constant 0 : index
    %101 = vector.load %arg4[%c48, %c0_41] : memref<64x128xf32, #tpu.memory_space<vmem>>, vector<16x128xf32>
    tpu.vector_store %arg4[%c48, %c0_41], %100 {strides = array<i32>} : memref<64x128xf32, #tpu.memory_space<vmem>>, vector<16x128xf32>,
    return
  }
  func.func @transform_0(%arg0: i32) -> (i32, i32) {
    %c0_i32 = arith.constant 0 : i32
    %c0_i32_0 = arith.constant 0 : i32
    %c0_i32_1 = arith.constant 0 : i32
    return %c0_i32, %c0_i32_0 : i32, i32
  }
  func.func @transform_1(%arg0: i32) -> (i32, i32) {
    %c0_i32 = arith.constant 0 : i32
    %c0_i32_0 = arith.constant 0 : i32
    return %c0_i32, %arg0 : i32, i32
  }
  func.func @transform_2(%arg0: i32) -> (i32, i32) {
    %c0_i32 = arith.constant 0 : i32
    %c0_i32_0 = arith.constant 0 : i32
    return %c0_i32, %arg0 : i32, i32
  }
  func.func @transform_3(%arg0: i32) -> (i32, i32) {
    %c0_i32 = arith.constant 0 : i32
    %c0_i32_0 = arith.constant 0 : i32
    return %c0_i32, %arg0 : i32, i32
  }
}

</mosaic_0001>

<bundles_post_ra>
// kernel: shared_sst_input_layer_forward.2
= control target key start
LH: loop header
LB: loop body
LE: loop exit
PB: predicated region body
PF: predicated region fallthrough
CT: control target
= control target key end

     0   :  { %vm21_vm0 = vcmask 64512   ;;  %v284_v3 = vmov 5   ;;  %v285_v4 = vmov 4   ;;  %v286_v11 = vmov 0   ;;  %s374_s1 = inlined_call_operand.vmem [shape: f32[8,128], index: 1, kind: input, shape index: {}]   ;;  %s375_s0 = inlined_call_operand.vmem [shape: f32[48,8], index: 0, kind: input, shape index: {}]   ;;  %s376_s2 = inlined_call_operand.vmem [shape: s32[8,128], index: 2, kind: input, shape index: {}]   ;;  %s377_s3 = inlined_call_operand.vmem [shape: s32[8,128], index: 3, kind: output, shape index: {}]  }
   0x1   :  { %v14_v0 = vld [vmem:[%s374_s1] sm:$0xff]  ;;  %v17_v1 = vld [vmem:[%s375_s0 + $0x10] sm:$0xff]  ;;  %v18_v2 = vld [vmem:[%s375_s0 + $0x18] sm:$0xff]  ;;  %277 = vset.pattern.permute.xlu0 %v284_v3  ;;  %278 = vset.pattern.permute.xlu1 %v285_v4  ;;  %234 = vst [vmem:[%s377_s3 + $0x1] sm:$0x1] %v286_v11  ;;  %v173_v22 = vlaneseq }
   0x2   :  { %268 = vmatprep.subr.mxu1 %v14_v0  ;;  %262 = vmatprep.mubr.msk.f32.mxu1 %vm21_vm0, %v17_v1  ;;  %v19_v5 = vld [vmem:[%s375_s0 + $0x20] sm:$0xff]  ;;  %v16_v7 = vld [vmem:[%s375_s0 + $0x8] sm:$0xff]  ;;  %239 = vst [vmem:[%s377_s3 + $0x4] sm:$0xf] %v286_v11 }
   0x3   :  { %v15_v6 = vld [vmem:[%s375_s0] sm:$0xff]  ;;  %269 = vmatpush3.msra.mxu1 %v14_v0  ;;  %257 = vmatprep.subr.mxu0 %v14_v0  ;;  %v146_v8 = vld [vmem:[%s375_s0 + $0x8] sm:$0xf]  ;;  %v174_v23 = vshrl.u32 %v173_v22, 7 }
   0x4   :  { %263 = vmatmul.mubr.msk.f32.vlgmr.msra.gmra.mrb[0].mxu1 %vm21_vm0, %v18_v2  ;;  %258 = vmatpush3.msra.mxu0 %v14_v0  ;;  %v20_v9 = vld [vmem:[%s375_s0 + $0x28] sm:$0xff]  ;;  %v147_v10 = vld [vmem:[%s376_s2] sm:$0x1] }
   0x5   :  { %265 = vmatprep.mubr.msk.f32.mxu1 %vm21_vm0, %v19_v5  ;;  %259 = vmatprep.mubr.msk.f32.mxu0 %vm21_vm0, %v15_v6  ;;  %233 = vst [vmem:[%s377_s3] sm:$0x1] %v147_v10  ;;  %v148_v27 = vcvt.s32.f32 %v147_v10  ;;  %v175_v28 = vsub.s32 0, %v174_v23  ;;  %v183_v35 = vadd.s32 8, %v174_v23 }
   0x6   :  { %260 = vmatmul.mubr.msk.f32.vlgmr.msra.gmra.mrb[0].mxu0 %vm21_vm0, %v16_v7  ;;  %170 = vperm.xlu0 %277, %v146_v8  }
   0x7   :  { %208 = vperm.xlu1 %278, %v146_v8   ;;  %v176_v33 = vrot.slane %v148_v27, %v175_v28 }
   0x8   :  { %266 = vmatmul.mubr.msk.f32.gmra.mrb[2].mxu1 %vm21_vm0, %v20_v9 }
   0xa   :  { %165 = vperm.xlu0 %277, %v15_v6  }
   0xb   :  { %204 = vperm.xlu1 %278, %v15_v6  }
   0xe   :  { %279 = vset.pattern.permute.xlu0 %v285_v4 }
  0x85   :  { %v171_v25 = vpop.permute.xlu0 %170 }
  0x86   :  { %vm178_vm0 = vcmp.eq.f32.partialorder %v171_v25, %v176_v33  ;;  %v209_v43 = vpop.permute.xlu1 %208 }
  0x89   :  { %v166_v34 = vpop.permute.xlu0 %165 }
  0x8a   :  { %vm177_vm15 = vcmp.eq.f32.partialorder %v166_v34, %v176_v33  ;;  %v205_v48 = vpop.permute.xlu1 %204 }
  0xd7   :  { %v264_v12 = vpop.f32.mrb[0].mxu1 }
  0xd8   :  { %v116_v13 = vpop.f32.mrb[1].mxu1 }
  0xd9   :  { %v261_v14 = vpop.f32.mrb[0].mxu0 }
  0xda   :  { %v106_v15 = vpop.f32.mrb[1].mxu0 }
  0xdb   :  { %v267_v16 = vpop.f32.mrb[2].mxu1 }
  0xdc   :  { %v136_v17 = vmax.f32 %v267_v16, 0.0001  ;;  %v126_v18 = vpop.f32.mrb[3].mxu1 }
  0xdd   :  { %v135_v19 = vmax.f32 %v126_v18, 0.0001 }
  0xde   :  { %v138_v20 = vmin.f32 %v136_v17, 10000.0 }
  0xdf   :  { %v137_v21 = vmin.f32 %v135_v19, 10000.0 }
  0xe0   :  { %280 = vrcp.f32 %v138_v20 }
  0xe1   :  { %282 = vrcp.f32 %v137_v21 }
  0xea   :  { %v281_v24 = vpop.eup %280 }
  0xeb   :  { %v283_v26 = vpop.eup %282  ;;  %v142_v29 = vmul.f32 %v281_v24, %v261_v14  ;;  %v144_v30 = vmul.f32 %v281_v24, %v264_v12 }
  0xec   :  { %v141_v31 = vmul.f32 %v283_v26, %v106_v15  ;;  %v143_v32 = vmul.f32 %v283_v26, %v116_v13 }
  0xed   :  { %vm150_vm1 = vcmp.ge.f32.partialorder %v142_v29, 0.0  ;;  %vm152_vm2 = vcmp.le.f32.partialorder %v142_v29, 32.0  ;;  %vm156_vm3 = vcmp.ge.f32.partialorder %v144_v30, 0.0  ;;  %vm160_vm8 = vcmp.le.f32.partialorder %v144_v30, 24.0 }
  0xee   :  { %vm154_vm4 = vmand %vm150_vm1, %vm152_vm2  ;;  %vm149_vm5 = vcmp.ge.f32.partialorder %v141_v31, 0.0  ;;  %vm151_vm6 = vcmp.le.f32.partialorder %v141_v31, 32.0  ;;  %vm155_vm9 = vcmp.ge.f32.partialorder %v143_v32, 0.0  ;;  %vm159_vm13 = vcmp.le.f32.partialorder %v143_v32, 24.0 }
  0xef   :  { %vm158_vm7 = vmand %vm154_vm4, %vm156_vm3  ;;  %vm186_vm1 = vcmask 1043456   ;;  %v211_v50 = vadd.f32 %v205_v48, %v141_v31  ;;  %v212_v51 = vadd.f32 %v209_v43, %v142_v29 }
  0xf0   :  { %vm162_vm10 = vmand %vm158_vm7, %vm160_vm8 }
  0xf1   :  { %vm153_vm11 = vmand %vm149_vm5, %vm151_vm6 }
  0xf2   :  { %vm157_vm12 = vmand %vm153_vm11, %vm155_vm9 }
  0xf3   :  { %vm161_vm14 = vmand %vm157_vm12, %vm159_vm13 }
  0xf4   :  { %vm349_vm2 = vmand %vm161_vm14, %vm177_vm15 }
  0xf5   :  { %vm353_vm3 = vmand %vm162_vm10, %vm178_vm0  ;;  %v184_v38 = vsel %vm349_vm2, %v174_v23, 4294967295 }
  0xf6   :  { %v185_v39 = vsel %vm353_vm3, %v183_v35, 4294967295 }
  0xf7   :  { %v187_v40 = vsel %vm186_vm1, %v185_v39, 2147483648 }
  0xf8   :  { %vm188_vm4 = vcmp.gt.s32.totalorder %v184_v38, %v187_v40 }
  0xf9   :  { %v189_v41 = vsel %vm188_vm4, %v184_v38, %v187_v40 }
  0xfa   :  { %v190_v42 = vrot.slane %v189_v41, 4 }
  0xfc   :  { %vm191_vm5 = vcmp.gt.s32.totalorder %v189_v41, %v190_v42 }
  0xfd   :  { %v192_v44 = vsel %vm191_vm5, %v189_v41, %v190_v42 }
  0xfe   :  { %v193_v45 = vrot.slane %v192_v44, 2 }
 0x100   :  { %vm194_vm6 = vcmp.gt.s32.totalorder %v192_v44, %v193_v45 }
 0x101   :  { %v195_v46 = vsel %vm194_vm6, %v192_v44, %v193_v45 }
 0x102   :  { %v196_v47 = vrot.slane %v195_v46, 1 }
 0x104   :  { %vm197_vm7 = vcmp.gt.s32.totalorder %v195_v46, %v196_v47 }
 0x105   :  { %v198_v49 = vsel %vm197_vm7, %v195_v46, %v196_v47 }
 0x106   :  { %vm199_vm8 = vcmp.eq.s32.totalorder %v184_v38, %v198_v49  ;;  %vm200_vm9 = vcmp.eq.s32.totalorder %v185_v39, %v198_v49 }
 0x107   :  { %vm201_vm10 = vmand %vm349_vm2, %vm199_vm8 }
 0x108   :  { %vm202_vm11 = vmand %vm353_vm3, %vm200_vm9  ;;  %v223_v52 = vsel %vm201_vm10, %v143_v32, 0.0  ;;  %v213_v53 = vsel %vm201_vm10, %v211_v50, 0.0 }
 0x109   :  { %v224_v54 = vsel %vm202_vm11, %v144_v30, 0.0  ;;  %v214_v55 = vsel %vm202_vm11, %v212_v51, 0.0 }
 0x10a   :  { %v225_v56 = vsel %vm186_vm1, %v224_v54, 0.0  ;;  %v215_v57 = vsel %vm186_vm1, %v214_v55, 0.0 }
 0x10b   :  { %v226_v58 = vadd.f32 %v225_v56, %v223_v52  ;;  %v216_v59 = vadd.f32 %v215_v57, %v213_v53 }
 0x10d   :  { %v227_v60 = vrot.slane %v226_v58, 4  ;;  %v217_v61 = vrot.slane %v216_v59, 4 }
 0x10f   :  { %v228_v62 = vadd.f32 %v227_v60, %v226_v58  ;;  %v218_v63 = vadd.f32 %v217_v61, %v216_v59 }
 0x111   :  { %v229_v0 = vrot.slane %v228_v62, 2  ;;  %v219_v1 = vrot.slane %v218_v63, 2 }
 0x113   :  { %v230_v2 = vadd.f32 %v229_v0, %v228_v62  ;;  %v220_v3 = vadd.f32 %v219_v1, %v218_v63 }
 0x115   :  { %v231_v4 = vrot.slane %v230_v2, 1  ;;  %v221_v5 = vrot.slane %v220_v3, 1 }
 0x117   :  { %v232_v6 = vadd.f32 %v231_v4, %v230_v2  ;;  %v222_v7 = vadd.f32 %v221_v5, %v220_v3 }
 0x119   :  { %v270_v8 = vtrunc.f32 %v232_v6  ;;  %v272_v9 = vtrunc.f32 %v222_v7 }
 0x11b   :  { %v271_v10 = vcvt.f32.s32 %v270_v8  ;;  %v273_v11 = vcvt.f32.s32 %v272_v9 }
 0x11d   :  { %236 = vst [vmem:[%s377_s3 + $0x2] sm:$0x1] %v271_v10  ;;  %238 = vst [vmem:[%s377_s3 + $0x3] sm:$0x1] %v273_v11 }

// kernel: shared_sst_input_layer_forward.3
= control target key start
LH: loop header
LB: loop body
LE: loop exit
PB: predicated region body
PF: predicated region fallthrough
CT: control target
= control target key end

     0   :  { %9 = vsyncpa [#allocation3], 0  ;;  %s1109_s12 = smov [#allocation2]   ;;  %s1856_s0 = inlined_call_operand.hbm [shape: f32[16,8], index: 0, kind: input, shape index: {}]   ;;  %s1857_s1 = inlined_call_operand.vmem [shape: s32[8,128], index: 1, kind: input, shape index: {}]   ;;  %s1858_s2 = inlined_call_operand.vmem [shape: s32[8,128], index: 2, kind: output, shape index: {0}]   ;;  %s1859_s3 = inlined_call_operand.vmem [shape: f32[64,128], index: 3, kind: output, shape index: {1}]  }
   0x1   :  { %s15_s13 = sshll.u32 %s1109_s12, 4  ;;  %s1085_s16 = scalar_lea.hbm %s1856_s0, 256  ;;  %s16_s13 = int_to_ptr.vmem [resolvable:$true] %s15_s13 }
   0x2   :  { %p1086_p0 = scmp.ne.s32.totalorder %s1856_s0, %s1085_s16  ;;  %p1089_p1 = scmp.lt.u32.totalorder %s1085_s16, %s1856_s0 }
   0x4   :  { %p1091_p2 = pnand %p1089_p1, %p1086_p0 }
   0x6   :  { %1094 = shalt.err (!%p1091_p2)
}
   0x7   :  { %s1095_s21 = scalar_lea.vmem %s16_s13, 256  ;;  %p1100_p4 = scmp.lt.s32.totalorder %s16_s13, %s16_s13 }
   0x8   :  { %p1096_p3 = scmp.ne.s32.totalorder %s16_s13, %s1095_s21  ;;  %p1101_p5 = scmp.lt.s32.totalorder %s1095_s21, %s1095_s21 }
   0xa   :  { %p1102_p6 = por %p1101_p5, %p1100_p4 }
   0xc   :  { %p1103_p7 = pnand %p1102_p6, %p1096_p3 }
   0xe   :  { %1106 = shalt.err (!%p1103_p7)
}
   0xf   :  { %s1110_s22 = smov 128   ;;  %s1111_s23 = smov 8  }
  0x10   :  { %21 = dma.hbm_to_vmem [thread:$0]  %s1856_s0, 256, %s16_s13, [#allocation3], %s1110_s22, %s1110_s22, %s1111_s23  }
  0x11   :  { %1107 = dma.done.wait [#allocation3], 256  }
  0x12   :  { %1108 = vsyncadd [#allocation3], 4294967040  ;;  %v1112_v0 = vmov 1   ;;  %v1113_v1 = vmov 0   ;;  %v27_v2 = vld [vmem:[#allocation2] sm:$0xff]  ;;  %v28_v6 = vld [vmem:[#allocation2 + $0x8] sm:$0xff]  ;;  %v53_v24 = vlaneseq }
  0x13   :  { %1051 = vset.pattern.permute.xlu1 %v1112_v0  ;;  %1050 = vset.pattern.permute.xlu0 %v1113_v1  ;;  %46 = vst [vmem:[%s1858_s2 + $0x1] sm:$0x1] %v1113_v1  ;;  %519 = vst [vmem:[%s1858_s2 + $0x5] sm:$0x1] %v1113_v1  ;;  %v31_v3 = vld [vmem:[%s1857_s1 + $0x2] sm:$0x1] }
  0x14   :  { %70 = vperm.xlu1 %1051, %v27_v2   ;;  %59 = vperm.xlu0 %1050, %v27_v2   ;;  %v32_v4 = vld [vmem:[%s1857_s1 + $0x3] sm:$0x1]  ;;  %v34_v5 = vadd.s32 8, %v31_v3  ;;  %v1167_v9 = vld [vmem:[%s1857_s1] sm:$0x1]  ;;  %v1189_v21 = vadd.s32 4, %v31_v3 }
  0x15   :  { %v33_v7 = vadd.s32 8, %v32_v4  ;;  %v39_v13 = vmul.u32 250, %v1167_v9  ;;  %v1181_v17 = vld [vmem:[%s1857_s1 + $0x1] sm:$0x1]  ;;  %v1187_v20 = vadd.s32 4, %v32_v4  ;;  %v54_v25 = vshrl.u32 %v53_v24, 7 }
  0x16   :  { %v38_v8 = vand.u32 7, %v34_v5  ;;  %v37_v12 = vshra.s32 %v34_v5, 3  ;;  %v512_v23 = vand.u32 7, %v1189_v21 }
  0x17   :  { %v35_v10 = vshra.s32 %v33_v7, 3  ;;  %v36_v11 = vand.u32 7, %v33_v7  ;;  %v510_v22 = vand.u32 7, %v1187_v20  ;;  %v55_v30 = vsub.s32 0, %v54_v25 }
  0x18   :  { %74 = vperm.xlu1 %1051, %v28_v6   ;;  %64 = vperm.xlu0 %1050, %v28_v6   ;;  %47 = vst [vmem:[%s1858_s2 + $0x2] sm:$0x1] %v38_v8  ;;  %v42_v15 = vmul.u32 2, %v37_v12  ;;  %520 = vst [vmem:[%s1858_s2 + $0x6] sm:$0x1] %v512_v23  ;;  %v51_v27 = vcvt.s32.f32 %v38_v8  ;;  %v524_v29 = vcvt.s32.f32 %v512_v23 }
  0x19   :  { %v40_v14 = vmul.u32 10, %v35_v10  ;;  %48 = vst [vmem:[%s1858_s2 + $0x3] sm:$0x1] %v36_v11  ;;  %521 = vst [vmem:[%s1858_s2 + $0x7] sm:$0x1] %v510_v22  ;;  %v49_v26 = vcvt.s32.f32 %v36_v11  ;;  %v522_v28 = vcvt.s32.f32 %v510_v22 }
  0x1a   :  { %v972_v32 = vadd.f32 -4.0, %v51_v27  ;;  %v990_v34 = vadd.f32 -4.0, %v524_v29  ;;  %v1115_v23 = vmov 2475754826   ;;  %v1116_v25 = vmov 2131351028  }
  0x1b   :  { %v41_v16 = vadd.s32 %v40_v14, %v39_v13  ;;  %v971_v31 = vadd.f32 -4.0, %v49_v26  ;;  %v989_v33 = vadd.f32 -4.0, %v522_v28  ;;  %v1117_v27 = vmov 2102212464  }
  0x1c   :  { %1052 = vset.pattern.permute.xlu0 %v1112_v0  ;;  %v292_v36 = vrot.slane %v972_v32, %v55_v30  ;;  %v1201_v38 = vrot.slane %v990_v34, %v55_v30  ;;  %v1118_v29 = vmov 920167782  }
  0x1d   :  { %v43_v18 = vadd.s32 %v42_v15, %v41_v16  ;;  %v56_v35 = vrot.slane %v971_v31, %v55_v30  ;;  %v1199_v37 = vrot.slane %v989_v33, %v55_v30 }
  0x1f   :  { %v44_v19 = vadd.s32 %v43_v18, %v1181_v17 }
  0x21   :  { %45 = vst [vmem:[%s1858_s2] sm:$0x1] %v44_v19  ;;  %v1114_v19 = vmov 683565275  }
  0x93   :  { %v71_v39 = vpop.permute.xlu1 %70  ;;  %v60_v40 = vpop.permute.xlu0 %59 }
  0x94   :  { %v67_v41 = vmul.f32 %v60_v40, %v56_v35  ;;  %v293_v42 = vmul.f32 %v292_v36, %v60_v40  ;;  %v530_v43 = vmul.f32 %v1199_v37, %v60_v40  ;;  %v748_v44 = vmul.f32 %v1201_v38, %v60_v40 }
  0x96   :  { %v1205_v45 = vadd.f32 %v71_v39, %v67_v41  ;;  %v1207_v46 = vadd.f32 %v530_v43, %v71_v39  ;;  %v1209_v47 = vadd.f32 %v748_v44, %v71_v39  ;;  %v1213_v49 = vadd.f32 %v293_v42, %v71_v39 }
  0x97   :  { %v1211_v48 = vpop.permute.xlu0 %64  ;;  %v1218_v53 = vpop.permute.xlu1 %74 }
  0x98   :  { %v68_v50 = vmul.f32 %v1211_v48, %v56_v35  ;;  %v79_v51 = vand.u32 2147483647, %v1205_v45  ;;  %v82_v52 = vand.u32 2139095040, %v1205_v45  ;;  %v300_v57 = vand.u32 2139095040, %v1213_v49 }
  0x99   :  { %v294_v63 = vmul.f32 %v292_v36, %v1211_v48  ;;  %v297_v0 = vand.u32 2147483647, %v1213_v49  ;;  %v1119_v36 = vmov 1326507024   ;;  %vm81_vm12 = vcmp.lt.s32.totalorder %v1205_v45, 0 }
  0x9a   :  { %v1221_v54 = vadd.f32 %v1218_v53, %v68_v50  ;;  %v83_v55 = vshrl.u32 %v82_v52, 23  ;;  %v86_v56 = vand.u32 8388607, %v79_v51  ;;  %v301_v61 = vshrl.u32 %v300_v57, 23 }
  0x9b   :  { %v1235_v11 = vadd.f32 %v294_v63, %v1218_v53  ;;  %v1242_v16 = vand.u32 8388607, %v297_v0  ;;  %vm1312_vm13 = vcmp.le.f32.partialorder %v79_v51, 0.7853982 }
  0x9c   :  { %v973_v58 = vadd.s32 4294967169, %v83_v55  ;;  %v183_v59 = vand.u32 2147483647, %v1221_v54  ;;  %v186_v60 = vand.u32 2139095040, %v1221_v54  ;;  %v87_v1 = vor.u32 8388608, %v86_v56 }
  0x9d   :  { %v981_v4 = vadd.s32 4294967169, %v301_v61  ;;  %vm185_vm15 = vcmp.lt.s32.totalorder %v1221_v54, 0 }
  0x9e   :  { %v89_v62 = vadd.s32 1, %v973_v58  ;;  %v187_v2 = vshrl.u32 %v186_v60, 23  ;;  %v1232_v3 = vand.u32 8388607, %v183_v59  ;;  %v1237_v12 = vshll.u32 %v87_v1, 8 }
  0x9f   :  { %v307_v7 = vadd.s32 1, %v981_v4 }
  0xa0   :  { %vm90_vm0 = vcmp.gt.s32.totalorder %v89_v62, 0  ;;  %v977_v6 = vadd.s32 4294967169, %v187_v2  ;;  %v191_v14 = vor.u32 8388608, %v1232_v3 }
  0xa1   :  { %v91_v5 = vsel %vm90_vm0, %v89_v62, 0  ;;  %vm308_vm1 = vcmp.gt.s32.totalorder %v307_v7, 0 }
  0xa2   :  { %v92_v8 = vshrl.u32 %v91_v5, 5  ;;  %v93_v10 = vand.u32 31, %v91_v5  ;;  %v193_v15 = vadd.s32 1, %v977_v6  ;;  %v305_v6 = vor.u32 8388608, %v1242_v16 }
  0xa4   :  { %v94_v18 = vsub.s32 32, %v93_v10  ;;  %v96_v22 = vshll.u32 %v1114_v19, %v93_v10  ;;  %v99_v24 = vshll.u32 %v1115_v23, %v93_v10  ;;  %v102_v26 = vshll.u32 %v1116_v25, %v93_v10 }
  0xa5   :  { %v105_v28 = vshll.u32 %v1117_v27, %v93_v10  ;;  %v108_v30 = vshll.u32 %v1118_v29, %v93_v10  ;;  %vm111_vm2 = vcmp.lt.s32.totalorder %v92_v8, 1  ;;  %vm112_vm3 = vcmp.lt.s32.totalorder %v92_v8, 2 }
  0xa6   :  { %v97_v31 = vshrl.u32 %v1115_v23, %v94_v18  ;;  %v100_v32 = vshrl.u32 %v1116_v25, %v94_v18  ;;  %v103_v33 = vshrl.u32 %v1117_v27, %v94_v18  ;;  %v95_v34 = vshrl.u32 %v1114_v19, %v94_v18 }
  0xa7   :  { %v106_v35 = vshrl.u32 %v1118_v29, %v94_v18  ;;  %v109_v39 = vshrl.u32 %v1119_v36, %v94_v18  ;;  %vm113_vm4 = vcmp.lt.s32.totalorder %v92_v8, 3  ;;  %vm194_vm5 = vcmp.gt.s32.totalorder %v193_v15, 0 }
  0xa8   :  { %v98_v40 = vor.u32 %v97_v31, %v96_v22  ;;  %v101_v41 = vor.u32 %v100_v32, %v99_v24  ;;  %v104_v42 = vor.u32 %v103_v33, %v102_v26  ;;  %vm114_vm6 = vcmp.lt.s32.totalorder %v92_v8, 4 }
  0xa9   :  { %v107_v43 = vor.u32 %v106_v35, %v105_v28  ;;  %v110_v44 = vor.u32 %v109_v39, %v108_v30  ;;  %v195_v50 = vsel %vm194_vm5, %v193_v15, 0  ;;  %v404_v10 = vand.u32 2139095040, %v1235_v11 }
  0xaa   :  { %v115_v52 = vsel %vm111_vm2, %v95_v34, %v98_v40  ;;  %v116_v55 = vsel %vm114_vm6, %v104_v42, 2102212464  ;;  %v119_v56 = vsel %vm111_vm2, %v98_v40, %v101_v41  ;;  %v123_v57 = vsel %vm111_vm2, %v101_v41, %v104_v42 }
  0xab   :  { %v117_v58 = vsel %vm113_vm4, %v101_v41, %v116_v55  ;;  %v120_v60 = vsel %vm114_vm6, %v107_v43, 920167782  ;;  %v124_v61 = vsel %vm114_vm6, %v110_v44, 1326507024  ;;  %v196_v62 = vshrl.u32 %v195_v50, 5 }
  0xac   :  { %v118_v63 = vsel %vm112_vm3, %v115_v52, %v117_v58  ;;  %v121_v1 = vsel %vm113_vm4, %v104_v42, %v120_v60  ;;  %v125_v2 = vsel %vm113_vm4, %v107_v43, %v124_v61  ;;  %v197_v3 = vand.u32 31, %v195_v50 }
  0xad   :  { %v122_v4 = vsel %vm112_vm3, %v119_v56, %v121_v1  ;;  %v126_v5 = vsel %vm112_vm3, %v123_v57, %v125_v2  ;;  %v134_v26 = vmul.u32 %v1237_v12, %v118_v63  ;;  %v1276_v30 = vshll.u32 %v191_v14, 8 }
  0xae   :  { %v1267_v15 = vmul.u32.u64.low %v1237_v12, %v126_v5  ;;  %v1268_v18 = vmul.u32.u64.high %v1237_v12, %v126_v5, %v1267_v15  ;;  %v1271_v22 = vmul.u32.u64.low %v1237_v12, %v122_v4  ;;  %v1272_v24 = vmul.u32.u64.high %v1237_v12, %v122_v4, %v1271_v22 }
  0xaf   :  { %v198_v28 = vsub.s32 32, %v197_v3  ;;  %v309_v8 = vsel %vm308_vm1, %v307_v7, 0  ;;  %v200_v16 = vshll.u32 %v1114_v19, %v197_v3  ;;  %v203_v31 = vshll.u32 %v1115_v23, %v197_v3 }
  0xb0   :  { %v206_v32 = vshll.u32 %v1116_v25, %v197_v3  ;;  %vm215_vm7 = vcmp.lt.s32.totalorder %v196_v62, 1  ;;  %v209_v12 = vshll.u32 %v1117_v27, %v197_v3  ;;  %vm136_vm8 = vc.u32 %v1268_v18, %v1271_v22 }
  0xb1   :  { %v201_v33 = vshrl.u32 %v1115_v23, %v198_v28  ;;  %v204_v34 = vshrl.u32 %v1116_v25, %v198_v28  ;;  %v207_v35 = vshrl.u32 %v1117_v27, %v198_v28  ;;  %v137_v7 = vadd.s32 1, %v1272_v24 }
  0xb2   :  { %v210_v14 = vshrl.u32 %v1118_v29, %v198_v28  ;;  %v212_v39 = vshll.u32 %v1118_v29, %v197_v3  ;;  %v213_v43 = vshrl.u32 %v1119_v36, %v198_v28  ;;  %vm216_vm9 = vcmp.lt.s32.totalorder %v196_v62, 2 }
  0xb3   :  { %v202_v40 = vor.u32 %v201_v33, %v200_v16  ;;  %v205_v41 = vor.u32 %v204_v34, %v203_v31  ;;  %v208_v42 = vor.u32 %v207_v35, %v206_v32  ;;  %v138_v44 = vsel %vm136_vm8, %v137_v7, %v1272_v24 }
  0xb4   :  { %v211_v50 = vor.u32 %v210_v14, %v209_v12  ;;  %vm218_vm10 = vcmp.lt.s32.totalorder %v196_v62, 4  ;;  %v139_v52 = vadd.s32 %v138_v44, %v134_v26  ;;  %v199_v55 = vshrl.u32 %v1114_v19, %v198_v28 }
  0xb5   :  { %v214_v56 = vor.u32 %v213_v43, %v212_v39  ;;  %v220_v57 = vsel %vm218_vm10, %v208_v42, 2102212464  ;;  %vm217_vm11 = vcmp.lt.s32.totalorder %v196_v62, 3  ;;  %v223_v58 = vsel %vm215_vm7, %v202_v40, %v205_v41 }
  0xb6   :  { %v224_v60 = vsel %vm218_vm10, %v211_v50, 920167782  ;;  %v227_v61 = vsel %vm215_vm7, %v205_v41, %v208_v42  ;;  %v140_v63 = vadd.s32 536870912, %v139_v52  ;;  %v219_v1 = vsel %vm215_vm7, %v199_v55, %v202_v40 }
  0xb7   :  { %v225_v2 = vsel %vm217_vm11, %v208_v42, %v224_v60  ;;  %v228_v3 = vsel %vm218_vm10, %v214_v56, 1326507024  ;;  %v221_v4 = vsel %vm217_vm11, %v205_v41, %v220_v57  ;;  %v311_v24 = vand.u32 31, %v309_v8 }
  0xb8   :  { %v226_v5 = vsel %vm216_vm9, %v223_v58, %v225_v2  ;;  %v229_v15 = vsel %vm217_vm11, %v211_v50, %v228_v3  ;;  %v141_v26 = vshrl.u32 %v140_v63, 30  ;;  %v222_v12 = vsel %vm216_vm9, %v219_v1, %v221_v4 }
  0xb9   :  { %v230_v28 = vsel %vm216_vm9, %v227_v61, %v229_v15  ;;  %v1300_v16 = vmul.u32.u64.low %v1276_v30, %v226_v5  ;;  %v1301_v31 = vmul.u32.u64.high %v1276_v30, %v226_v5, %v1300_v16  ;;  %v312_v34 = vsub.s32 32, %v311_v24 }
  0xba   :  { %v1305_v32 = vmul.u32.u64.low %v1276_v30, %v230_v28  ;;  %v1306_v33 = vmul.u32.u64.high %v1276_v30, %v230_v28, %v1305_v32  ;;  %v142_v35 = vshll.u32 %v141_v26, 30  ;;  %v1316_v14 = vshll.u32 %v305_v6, 8 }
  0xbb   :  { %v401_v39 = vand.u32 2147483647, %v1235_v11  ;;  %v405_v40 = vshrl.u32 %v404_v10, 23  ;;  %v165_v42 = vsub.s32 4, %v141_v26  ;;  %v241_v43 = vadd.s32 1, %v1301_v31 }
  0xbc   :  { %v1319_v41 = vsub.s32 %v139_v52, %v142_v35  ;;  %v1322_v44 = vshrl.u32 %v309_v8, 5  ;;  %v238_v62 = vmul.u32 %v1276_v30, %v222_v12  ;;  %vm240_vm14 = vc.u32 %v1306_v33, %v1300_v16 }
  0xbd   :  { %v314_v51 = vshll.u32 %v1114_v19, %v311_v24  ;;  %v321_v6 = vshrl.u32 %v1117_v27, %v312_v34  ;;  %v242_v10 = vsel %vm240_vm14, %v241_v43, %v1301_v31  ;;  %v315_v52 = vshrl.u32 %v1115_v23, %v312_v34 }
  0xbe   :  { %v145_v50 = vsub.s32 0, %v1319_v41  ;;  %v318_v55 = vshrl.u32 %v1116_v25, %v312_v34  ;;  %v243_v56 = vadd.s32 %v242_v10, %v238_v62  ;;  %v320_v8 = vshll.u32 %v1116_v25, %v311_v24 }
  0xbf   :  { %v323_v30 = vshll.u32 %v1117_v27, %v311_v24  ;;  %v324_v57 = vshrl.u32 %v1118_v29, %v312_v34  ;;  %v166_v60 = vsel %vm81_vm12, %v165_v42, %v141_v26  ;;  %v317_v61 = vshll.u32 %v1115_v23, %v311_v24 }
  0xc0   :  { %v974_v58 = vmin.u32 %v145_v50, %v1319_v41  ;;  %v327_v63 = vshrl.u32 %v1119_v36, %v312_v34  ;;  %v244_v1 = vadd.s32 536870912, %v243_v56  ;;  %v322_v2 = vor.u32 %v321_v6, %v320_v8 }
  0xc1   :  { %v325_v3 = vor.u32 %v324_v57, %v323_v30  ;;  %v326_v4 = vshll.u32 %v1118_v29, %v311_v24  ;;  %v135_v5 = vadd.s32 %v1271_v22, %v1268_v18  ;;  %v316_v28 = vor.u32 %v315_v52, %v314_v51 }
  0xc2   :  { %v147_v15 = vclz %v974_v58  ;;  %v319_v31 = vor.u32 %v318_v55, %v317_v61  ;;  %v245_v32 = vshrl.u32 %v244_v1, 30  ;;  %v313_v26 = vshrl.u32 %v1114_v19, %v312_v34 }
  0xc3   :  { %v328_v35 = vor.u32 %v327_v63, %v326_v4  ;;  %vm332_vm0 = vcmp.lt.s32.totalorder %v1322_v44, 4  ;;  %v168_v42 = vsel %vm1312_vm13, 0, %v166_v60  ;;  %vm329_vm1 = vcmp.lt.s32.totalorder %v1322_v44, 1 }
  0xc4   :  { %v975_v12 = vadd.s32 4294967294, %v147_v15  ;;  %v338_v18 = vsel %vm332_vm0, %v325_v3, 920167782  ;;  %v246_v22 = vshll.u32 %v245_v32, 30  ;;  %vm330_vm2 = vcmp.lt.s32.totalorder %v1322_v44, 2 }
  0xc5   :  { %vm331_vm3 = vcmp.lt.s32.totalorder %v1322_v44, 3  ;;  %v334_v24 = vsel %vm332_vm0, %v322_v2, 2102212464  ;;  %v269_v34 = vsub.s32 4, %v245_v32  ;;  %v337_v43 = vsel %vm329_vm1, %v316_v28, %v319_v31 }
  0xc6   :  { %vm976_vm4 = vcmp.lt.s32.totalorder %v975_v12, 0  ;;  %v339_v62 = vsel %vm331_vm3, %v322_v2, %v338_v18  ;;  %v247_v6 = vsub.s32 %v243_v56, %v246_v22  ;;  %v341_v50 = vsel %vm329_vm1, %v319_v31, %v322_v2 }
  0xc7   :  { %v150_v51 = vsel %vm976_vm4, 0, %v975_v12  ;;  %v342_v10 = vsel %vm332_vm0, %v328_v35, 1326507024  ;;  %v333_v8 = vsel %vm329_vm1, %v313_v26, %v316_v28  ;;  %v335_v30 = vsel %vm331_vm3, %v319_v31, %v334_v24 }
  0xc8   :  { %v151_v52 = vsub.s32 32, %v150_v51  ;;  %v155_v55 = vsub.s32 4294967266, %v150_v51  ;;  %v152_v57 = vshll.u32 %v1319_v41, %v150_v51  ;;  %v249_v58 = vsub.s32 0, %v247_v6 }
  0xc9   :  { %v340_v56 = vsel %vm330_vm2, %v337_v43, %v339_v62  ;;  %v343_v60 = vsel %vm331_vm3, %v325_v3, %v342_v10  ;;  %v985_v2 = vadd.s32 4294967169, %v405_v40  ;;  %v270_v15 = vsel %vm185_vm15, %v269_v34, %v245_v32 }
  0xca   :  { %v153_v61 = vshrl.u32 %v135_v5, %v151_v52  ;;  %v156_v63 = vadd.s32 127, %v155_v55  ;;  %v344_v1 = vsel %vm330_vm2, %v341_v50, %v343_v60  ;;  %v978_v4 = vmin.u32 %v249_v58, %v247_v6 }
  0xcb   :  { %v1378_v28 = vmul.u32.u64.low %v1316_v14, %v344_v1  ;;  %v1379_v41 = vmul.u32.u64.high %v1316_v14, %v344_v1, %v1378_v28  ;;  %v1382_v35 = vmul.u32.u64.low %v1316_v14, %v340_v56  ;;  %v1383_v12 = vmul.u32.u64.high %v1316_v14, %v340_v56, %v1382_v35 }
  0xcc   :  { %v154_v31 = vor.u32 %v153_v61, %v152_v57  ;;  %v157_v26 = vshll.u32 %v156_v63, 23  ;;  %vm1387_vm5 = vcmp.le.f32.partialorder %v183_v59, 0.7853982  ;;  %v251_v40 = vclz %v978_v4 }
  0xcd   :  { %v336_v32 = vsel %vm330_vm2, %v333_v8, %v335_v30  ;;  %v408_v18 = vand.u32 8388607, %v401_v39  ;;  %v411_v22 = vadd.s32 1, %v985_v2  ;;  %v172_v24 = vadd.s32 3, %v168_v42 }
  0xce   :  { %v158_v5 = vor.u32 4788187, %v157_v26  ;;  %v979_v34 = vadd.s32 4294967294, %v251_v40  ;;  %v272_v43 = vsel %vm1387_vm5, 0, %v270_v15  ;;  %vm354_vm6 = vc.u32 %v1379_v41, %v1382_v35 }
  0xcf   :  { %v161_v62 = vcvt.s32.f32 %v154_v31  ;;  %v355_v51 = vadd.s32 1, %v1383_v12  ;;  %vm412_vm7 = vcmp.gt.s32.totalorder %v411_v22, 0  ;;  %v352_v44 = vmul.u32 %v1316_v14, %v336_v32 }
  0xd0   :  { %v159_v59 = vand.u32 2147483647, %v158_v5  ;;  %vm980_vm8 = vcmp.lt.s32.totalorder %v979_v34, 0  ;;  %v413_v50 = vsel %vm412_vm7, %v411_v22, 0  ;;  %v276_v55 = vadd.s32 3, %v272_v43 }
  0xd1   :  { %v254_v52 = vsel %vm980_vm8, 0, %v979_v34  ;;  %v356_v42 = vsel %vm354_vm6, %v355_v51, %v1383_v12  ;;  %v239_v8 = vadd.s32 %v1300_v16, %v1306_v33  ;;  %v1403_v60 = vand.u32 3, %v172_v24 }
  0xd2   :  { %v162_v10 = vmul.f32 %v161_v62, %v159_v59  ;;  %v255_v30 = vsub.s32 32, %v254_v52  ;;  %v259_v57 = vsub.s32 4294967266, %v254_v52  ;;  %v357_v58 = vadd.s32 %v356_v42, %v352_v44 }
  0xd3   :  { %v409_v61 = vor.u32 8388608, %v408_v18  ;;  %v415_v63 = vand.u32 31, %v413_v50  ;;  %v256_v1 = vshll.u32 %v247_v6, %v254_v52  ;;  %v1407_v28 = vand.u32 3, %v276_v55 }
  0xd4   :  { %v163_v56 = vxor.u32 2147483648, %v162_v10  ;;  %v257_v2 = vshrl.u32 %v239_v8, %v255_v30  ;;  %v260_v14 = vadd.s32 127, %v259_v57  ;;  %v358_v4 = vadd.s32 536870912, %v357_v58 }
  0xd5   :  { %v1410_v31 = vadd.s32 %v1382_v35, %v1379_v41  ;;  %v416_v16 = vsub.s32 32, %v415_v63  ;;  %v1417_v6 = vshll.u32 %v409_v61, 8  ;;  %v509_v5 = vshra.s32 %v1187_v20, 3 }
  0xd6   :  { %v164_v15 = vsel %vm81_vm12, %v163_v56, %v162_v10  ;;  %v258_v26 = vor.u32 %v257_v2, %v256_v1  ;;  %v261_v12 = vshll.u32 %v260_v14, 23  ;;  %v1415_v40 = vshrl.u32 %v358_v4, 30 }
  0xd7   :  { %v167_v33 = vsel %vm1312_vm13, %v1205_v45, %v164_v15  ;;  %v511_v32 = vshra.s32 %v1189_v21, 3  ;;  %v1422_v35 = vshrl.u32 %v413_v50, 5  ;;  %v418_v7 = vshll.u32 %v1114_v19, %v415_v63 }
  0xd8   :  { %1053 = vcosq.f32 %v167_v33  ;;  %v262_v18 = vor.u32 4788187, %v261_v12  ;;  %v360_v41 = vshll.u32 %v1415_v40, 30  ;;  %v265_v22 = vcvt.s32.f32 %v258_v26 }
  0xd9   :  { %1055 = vsinq.f32 %v167_v33  ;;  %v419_v24 = vshrl.u32 %v1115_v23, %v416_v16  ;;  %v422_v34 = vshrl.u32 %v1116_v25, %v416_v16  ;;  %v424_v62 = vshll.u32 %v1116_v25, %v415_v63 }
  0xda   :  { %v263_v43 = vand.u32 2147483647, %v262_v18  ;;  %v1427_v59 = vsub.s32 %v357_v58, %v360_v41  ;;  %v425_v51 = vshrl.u32 %v1117_v27, %v416_v16  ;;  %vm178_vm9 = vcmp.eq.s32.totalorder %v1403_v60, 2 }
  0xdb   :  { %v421_v44 = vshll.u32 %v1115_v23, %v415_v63  ;;  %v427_v50 = vshll.u32 %v1117_v27, %v415_v63  ;;  %v428_v10 = vshrl.u32 %v1118_v29, %v416_v16  ;;  %v431_v52 = vshrl.u32 %v1119_v36, %v416_v16 }
  0xdc   :  { %vm175_vm10 = vcmp.eq.s32.totalorder %v1403_v60, 0  ;;  %v266_v55 = vmul.f32 %v265_v22, %v263_v43  ;;  %v363_v42 = vsub.s32 0, %v1427_v59  ;;  %v426_v8 = vor.u32 %v425_v51, %v424_v62 }
  0xdd   :  { %vm433_vm11 = vcmp.lt.s32.totalorder %v1422_v35, 1  ;;  %vm174_vm12 = vcmp.lt.s32.totalorder %v1403_v60, 2  ;;  %v420_v30 = vor.u32 %v419_v24, %v418_v7  ;;  %v423_v57 = vor.u32 %v422_v34, %v421_v44 }
  0xde   :  { %v429_v58 = vor.u32 %v428_v10, %v427_v50  ;;  %v430_v56 = vshll.u32 %v1118_v29, %v415_v63  ;;  %vm171_vm13 = vweird.f32 %v1205_v45  ;;  %v267_v61 = vxor.u32 2147483648, %v266_v55 }
  0xdf   :  { %v982_v1 = vmin.u32 %v363_v42, %v1427_v59  ;;  %vm434_vm14 = vcmp.lt.s32.totalorder %v1422_v35, 2  ;;  %vm436_vm0 = vcmp.lt.s32.totalorder %v1422_v35, 4  ;;  %v417_v2 = vshrl.u32 %v1114_v19, %v416_v16 }
  0xe0   :  { %v432_v14 = vor.u32 %v431_v52, %v430_v56  ;;  %v438_v4 = vsel %vm436_vm0, %v426_v8, 2102212464  ;;  %v442_v15 = vsel %vm436_vm0, %v429_v58, 920167782  ;;  %v268_v63 = vsel %vm185_vm15, %v267_v61, %v266_v55 }
  0xe1   :  { %v365_v33 = vclz %v982_v1  ;;  %v383_v26 = vsub.s32 4, %v1415_v40  ;;  %vm435_vm1 = vcmp.lt.s32.totalorder %v1422_v35, 3  ;;  %v271_v16 = vsel %vm1387_vm5, %v1221_v54, %v268_v63 }
  0xe2   :  { %v1054_v12 = vpop.eup %1053  ;;  %v437_v18 = vsel %vm433_vm11, %v417_v2, %v420_v30  ;;  %v441_v41 = vsel %vm433_vm11, %v420_v30, %v423_v57  ;;  %v443_v22 = vsel %vm435_vm1, %v426_v8, %v442_v15  ;;  %1057 = vcosq.f32 %v271_v16 }
  0xe3   :  { %v1056_v7 = vpop.eup %1055  ;;  %v179_v24 = vxor.u32 2147483648, %v1054_v12  ;;  %vm299_vm15 = vcmp.lt.s32.totalorder %v1213_v49, 0  ;;  %v983_v34 = vadd.s32 4294967294, %v365_v33  ;;  %v439_v43 = vsel %vm435_vm1, %v423_v57, %v438_v4 }
  0xe4   :  { %v176_v3 = vxor.u32 2147483648, %v1056_v7  ;;  %1059 = vsinq.f32 %v271_v16  ;;  %v445_v62 = vsel %vm433_vm11, %v423_v57, %v426_v8  ;;  %v446_v51 = vsel %vm436_vm0, %v432_v14, 1326507024 }
  0xe5   :  { %v180_v44 = vsel %vm178_vm9, %v179_v24, %v1056_v7  ;;  %vm984_vm2 = vcmp.lt.s32.totalorder %v983_v34, 0  ;;  %v444_v50 = vsel %vm434_vm14, %v441_v41, %v443_v22  ;;  %v447_v10 = vsel %vm435_vm1, %v429_v58, %v446_v51 }
  0xe6   :  { %v177_v52 = vsel %vm175_vm10, %v1054_v12, %v176_v3  ;;  %v368_v55 = vsel %vm984_vm2, 0, %v983_v34  ;;  %v448_v42 = vsel %vm434_vm14, %v445_v62, %v447_v10  ;;  %v513_v8 = vmul.u32 10, %v509_v5 }
  0xe7   :  { %v181_v30 = vsel %vm174_vm12, %v177_v52, %v180_v44  ;;  %v369_v57 = vsub.s32 32, %v368_v55  ;;  %v370_v56 = vshll.u32 %v1427_v59, %v368_v55  ;;  %v373_v61 = vsub.s32 4294967266, %v368_v55 }
  0xe8   :  { %v182_v58 = vsel %vm171_vm13, nan, %v181_v30  ;;  %v1488_v1 = vmul.u32.u64.low %v1417_v6, %v448_v42  ;;  %v1489_v2 = vmul.u32.u64.high %v1417_v6, %v448_v42, %v1488_v1  ;;  %v514_v14 = vadd.s32 %v513_v8, %v39_v13 }
  0xe9   :  { %287 = vst [vmem:[%s1859_s3] sm:$0xff] %v182_v58  ;;  %v371_v20 = vshrl.u32 %v1410_v31, %v369_v57  ;;  %v374_v60 = vadd.s32 127, %v373_v61  ;;  %v1498_v5 = vmul.u32.u64.low %v1417_v6, %v444_v50  ;;  %v1499_v59 = vmul.u32.u64.high %v1417_v6, %v444_v50, %v1498_v5 }
  0xea   :  { %vm278_vm3 = vcmp.lt.s32.totalorder %v1407_v28, 2  ;;  %vm279_vm4 = vcmp.eq.s32.totalorder %v1407_v28, 0  ;;  %vm1505_vm5 = vcmp.le.f32.partialorder %v297_v0, 0.7853982  ;;  %v515_v13 = vmul.u32 2, %v511_v32 }
  0xeb   :  { %v372_v45 = vor.u32 %v371_v20, %v370_v56  ;;  %v375_v31 = vshll.u32 %v374_v60, 23  ;;  %v440_v4 = vsel %vm434_vm14, %v437_v18, %v439_v43  ;;  %v537_v15 = vand.u32 2139095040, %v1207_v46 }
  0xec   :  { %vm282_vm6 = vcmp.eq.s32.totalorder %v1407_v28, 2  ;;  %v384_v63 = vsel %vm299_vm15, %v383_v26, %v1415_v40  ;;  %vm458_vm7 = vc.u32 %v1489_v2, %v1498_v5  ;;  %v516_v0 = vadd.s32 %v515_v13, %v514_v14  ;;  %v1058_v33 = vpop.eup %1057 }
  0xed   :  { %v376_v12 = vor.u32 4788187, %v375_v31  ;;  %v459_v21 = vadd.s32 1, %v1499_v59  ;;  %v531_v32 = vmul.f32 %v1199_v37, %v1211_v48  ;;  %v534_v35 = vand.u32 2147483647, %v1207_v46 }
  0xee   :  { %v1060_v16 = vpop.eup %1059  ;;  %v283_v18 = vxor.u32 2147483648, %v1058_v33  ;;  %v456_v41 = vmul.u32 %v1417_v6, %v440_v4  ;;  %v517_v22 = vadd.s32 %v516_v0, %v1181_v17  ;;  %v538_v7 = vshrl.u32 %v537_v15, 23 }
  0xef   :  { %v280_v40 = vxor.u32 2147483648, %v1060_v16  ;;  %v377_v26 = vand.u32 2147483647, %v376_v12  ;;  %v379_v24 = vcvt.s32.f32 %v372_v45  ;;  %v460_v34 = vsel %vm458_vm7, %v459_v21, %v1499_v59 }
  0xf0   :  { %v284_v43 = vsel %vm282_vm6, %v283_v18, %v1060_v16  ;;  %v386_v37 = vsel %vm1505_vm5, 0, %v384_v63  ;;  %v461_v3 = vadd.s32 %v460_v34, %v456_v41  ;;  %518 = vst [vmem:[%s1858_s2 + $0x4] sm:$0x1] %v517_v22  ;;  %v991_v6 = vadd.s32 4294967169, %v538_v7 }
  0xf1   :  { %v281_v17 = vsel %vm279_vm4, %v1058_v33, %v280_v40  ;;  %v380_v62 = vmul.f32 %v379_v24, %v377_v26  ;;  %v1536_v51 = vadd.f32 %v531_v32, %v1218_v53  ;;  %v541_v44 = vand.u32 8388607, %v534_v35 }
  0xf2   :  { %vm275_vm8 = vweird.f32 %v1221_v54  ;;  %v285_v50 = vsel %vm278_vm3, %v281_v17, %v284_v43  ;;  %v462_v10 = vadd.s32 536870912, %v461_v3  ;;  %v544_v52 = vadd.s32 1, %v991_v6 }
  0xf3   :  { %v286_v55 = vsel %vm275_vm8, nan, %v285_v50  ;;  %v381_v42 = vxor.u32 2147483648, %v380_v62  ;;  %v390_v8 = vadd.s32 3, %v386_v37  ;;  %v542_v56 = vor.u32 8388608, %v541_v44 }
  0xf4   :  { %288 = vst [vmem:[%s1859_s3 + $0x8] sm:$0xff] %v286_v55  ;;  %v1546_v30 = vshrl.u32 %v462_v10, 30  ;;  %vm545_vm9 = vcmp.gt.s32.totalorder %v544_v52, 0  ;;  %v641_v28 = vand.u32 2139095040, %v1536_v51  ;;  %v457_v20 = vadd.s32 %v1498_v5, %v1489_v2 }
  0xf5   :  { %v382_v57 = vsel %vm299_vm15, %v381_v42, %v380_v62  ;;  %v546_v54 = vsel %vm545_vm9, %v544_v52, 0  ;;  %v1555_v1 = vand.u32 3, %v390_v8  ;;  %v1560_v13 = vshll.u32 %v542_v56, 8 }
  0xf6   :  { %v385_v61 = vsel %vm1505_vm5, %v1213_v49, %v382_v57  ;;  %v464_v58 = vshll.u32 %v1546_v30, 30  ;;  %v548_v14 = vand.u32 31, %v546_v54  ;;  %v638_v45 = vand.u32 2147483647, %v1536_v51 }
  0xf7   :  { %1061 = vcosq.f32 %v385_v61  ;;  %v642_v31 = vshrl.u32 %v641_v28, 23  ;;  %v1564_v4 = vshrl.u32 %v546_v54, 5  ;;  %vm396_vm10 = vcmp.eq.s32.totalorder %v1555_v1, 2 }
  0xf8   :  { %1063 = vsinq.f32 %v385_v61  ;;  %v1558_v60 = vsub.s32 %v461_v3, %v464_v58  ;;  %v549_v59 = vsub.s32 32, %v548_v14  ;;  %v551_v15 = vshll.u32 %v1114_v19, %v548_v14 }
  0xf9   :  { %v554_v63 = vshll.u32 %v1115_v23, %v548_v14  ;;  %v557_v0 = vshll.u32 %v1116_v25, %v548_v14  ;;  %vm393_vm11 = vcmp.eq.s32.totalorder %v1555_v1, 0  ;;  %v560_v21 = vshll.u32 %v1117_v27, %v548_v14 }
  0xfa   :  { %v467_v9 = vsub.s32 0, %v1558_v60  ;;  %v552_v2 = vshrl.u32 %v1115_v23, %v549_v59  ;;  %v555_v5 = vshrl.u32 %v1116_v25, %v549_v59  ;;  %v558_v33 = vshrl.u32 %v1117_v27, %v549_v59 }
  0xfb   :  { %v561_v32 = vshrl.u32 %v1118_v29, %v549_v59  ;;  %v563_v16 = vshll.u32 %v1118_v29, %v548_v14  ;;  %vm392_vm12 = vcmp.lt.s32.totalorder %v1555_v1, 2  ;;  %v564_v7 = vshrl.u32 %v1119_v36, %v549_v59 }
  0xfc   :  { %v986_v12 = vmin.u32 %v467_v9, %v1558_v60  ;;  %v553_v18 = vor.u32 %v552_v2, %v551_v15  ;;  %v556_v41 = vor.u32 %v555_v5, %v554_v63  ;;  %v559_v22 = vor.u32 %v558_v33, %v557_v0 }
  0xfd   :  { %vm389_vm13 = vweird.f32 %v1213_v49  ;;  %vm403_vm14 = vcmp.lt.s32.totalorder %v1235_v11, 0  ;;  %v487_v26 = vsub.s32 4, %v1546_v30  ;;  %vm566_vm0 = vcmp.lt.s32.totalorder %v1564_v4, 1 }
  0xfe   :  { %v469_v40 = vclz %v986_v12  ;;  %v995_v24 = vadd.s32 4294967169, %v642_v31  ;;  %v550_v34 = vshrl.u32 %v1114_v19, %v549_v59  ;;  %v562_v43 = vor.u32 %v561_v32, %v560_v21 }
  0xff   :  { %v565_v37 = vor.u32 %v564_v7, %v563_v16  ;;  %vm567_vm1 = vcmp.lt.s32.totalorder %v1564_v4, 2  ;;  %vm568_vm15 = vcmp.lt.s32.totalorder %v1564_v4, 3  ;;  %vm569_vm2 = vcmp.lt.s32.totalorder %v1564_v4, 4 }
 0x100   :  { %v987_v3 = vadd.s32 4294967294, %v469_v40  ;;  %v574_v6 = vsel %vm566_vm0, %v553_v18, %v556_v41  ;;  %v570_v62 = vsel %vm566_vm0, %v550_v34, %v553_v18  ;;  %v571_v44 = vsel %vm569_vm2, %v559_v22, 2102212464 }
 0x101   :  { %v1062_v17 = vpop.eup %1061  ;;  %v575_v50 = vsel %vm569_vm2, %v562_v43, 920167782  ;;  %v578_v10 = vsel %vm566_vm0, %v556_v41, %v559_v22  ;;  %v579_v8 = vsel %vm569_vm2, %v565_v37, 1326507024  ;;  %v572_v54 = vsel %vm568_vm15, %v556_v41, %v571_v44 }
 0x102   :  { %v1064_v52 = vpop.eup %1063  ;;  %v397_v55 = vxor.u32 2147483648, %v1062_v17  ;;  %vm988_vm3 = vcmp.lt.s32.totalorder %v987_v3, 0  ;;  %v576_v42 = vsel %vm568_vm15, %v559_v22, %v575_v50  ;;  %v580_v9 = vsel %vm568_vm15, %v562_v43, %v579_v8 }
 0x103   :  { %v394_v57 = vxor.u32 2147483648, %v1064_v52  ;;  %v472_v56 = vsel %vm988_vm3, 0, %v987_v3  ;;  %v577_v28 = vsel %vm567_vm1, %v574_v6, %v576_v42  ;;  %v488_v12 = vsel %vm403_vm14, %v487_v26, %v1546_v30 }
 0x104   :  { %v398_v61 = vsel %vm396_vm10, %v397_v55, %v1064_v52  ;;  %v473_v58 = vsub.s32 32, %v472_v56  ;;  %v474_v14 = vshll.u32 %v1558_v60, %v472_v56  ;;  %v477_v59 = vsub.s32 4294967266, %v472_v56 }
 0x105   :  { %v395_v31 = vsel %vm393_vm11, %v1062_v17, %v394_v57  ;;  %v1602_v15 = vmul.u32.u64.low %v1560_v13, %v577_v28  ;;  %v1603_v63 = vmul.u32.u64.high %v1560_v13, %v577_v28, %v1602_v15  ;;  %v581_v60 = vsel %vm567_vm1, %v578_v10, %v580_v9 }
 0x106   :  { %v399_v2 = vsel %vm392_vm12, %v395_v31, %v398_v61  ;;  %v475_v5 = vshrl.u32 %v457_v20, %v473_v58  ;;  %v478_v0 = vadd.s32 127, %v477_v59  ;;  %v573_v1 = vsel %vm567_vm1, %v570_v62, %v572_v54 }
 0x107   :  { %v400_v33 = vsel %vm389_vm13, nan, %v399_v2  ;;  %v1616_v21 = vmul.u32.u64.low %v1560_v13, %v581_v60  ;;  %v1617_v32 = vmul.u32.u64.high %v1560_v13, %v581_v60, %v1616_v21  ;;  %v648_v20 = vadd.s32 1, %v995_v24 }
 0x108   :  { %v476_v16 = vor.u32 %v475_v5, %v474_v14  ;;  %v479_v18 = vshll.u32 %v478_v0, 23  ;;  %505 = vst [vmem:[%s1859_s3 + $0x10] sm:$0xff] %v400_v33  ;;  %v592_v49 = vadd.s32 1, %v1603_v63  ;;  %v645_v41 = vand.u32 8388607, %v638_v45 }
 0x109   :  { %vm1629_vm4 = vcmp.le.f32.partialorder %v401_v39, 0.7853982  ;;  %vm649_vm5 = vcmp.gt.s32.totalorder %v648_v20, 0  ;;  %v589_v4 = vmul.u32 %v1560_v13, %v573_v1  ;;  %vm591_vm6 = vc.u32 %v1617_v32, %v1602_v15 }
 0x10a   :  { %v480_v22 = vor.u32 4788187, %v479_v18  ;;  %v490_v7 = vsel %vm1629_vm4, 0, %v488_v12  ;;  %v650_v40 = vsel %vm649_vm5, %v648_v20, 0  ;;  %v483_v24 = vcvt.s32.f32 %v476_v16 }
 0x10b   :  { %v593_v34 = vsel %vm591_vm6, %v592_v49, %v1603_v63  ;;  %v652_v43 = vand.u32 31, %v650_v40  ;;  %v646_v37 = vor.u32 8388608, %v645_v41  ;;  %v494_v6 = vadd.s32 3, %v490_v7 }
 0x10c   :  { %v481_v26 = vand.u32 2147483647, %v480_v22  ;;  %v594_v39 = vadd.s32 %v593_v34, %v589_v4  ;;  %v1639_v17 = vshrl.u32 %v650_v40, 5  ;;  %v755_v63 = vand.u32 2139095040, %v1209_v47 }
 0x10d   :  { %v653_v62 = vsub.s32 32, %v652_v43  ;;  %v655_v50 = vshll.u32 %v1114_v19, %v652_v43  ;;  %v658_v13 = vshll.u32 %v1115_v23, %v652_v43  ;;  %v661_v10 = vshll.u32 %v1116_v25, %v652_v43 }
 0x10e   :  { %v484_v3 = vmul.f32 %v483_v24, %v481_v26  ;;  %v595_v44 = vadd.s32 536870912, %v594_v39  ;;  %v664_v8 = vshll.u32 %v1117_v27, %v652_v43  ;;  %v667_v59 = vshll.u32 %v1118_v29, %v652_v43 }
 0x10f   :  { %v656_v55 = vshrl.u32 %v1115_v23, %v653_v62  ;;  %v659_v42 = vshrl.u32 %v1116_v25, %v653_v62  ;;  %v662_v56 = vshrl.u32 %v1117_v27, %v653_v62  ;;  %v665_v54 = vshrl.u32 %v1118_v29, %v653_v62 }
 0x110   :  { %v485_v52 = vxor.u32 2147483648, %v484_v3  ;;  %v1647_v57 = vshrl.u32 %v595_v44, 30  ;;  %v668_v28 = vshrl.u32 %v1119_v36, %v653_v62  ;;  %vm670_vm7 = vcmp.lt.s32.totalorder %v1639_v17, 1 }
 0x111   :  { %v657_v58 = vor.u32 %v656_v55, %v655_v50  ;;  %v660_v14 = vor.u32 %v659_v42, %v658_v13  ;;  %v663_v2 = vor.u32 %v662_v56, %v661_v10  ;;  %v666_v5 = vor.u32 %v665_v54, %v664_v8 }
 0x112   :  { %v486_v61 = vsel %vm403_vm14, %v485_v52, %v484_v3  ;;  %v597_v9 = vshll.u32 %v1647_v57, 30  ;;  %v669_v0 = vor.u32 %v668_v28, %v667_v59  ;;  %v495_v33 = vand.u32 3, %v494_v6 }
 0x113   :  { %v489_v31 = vsel %vm1629_vm4, %v1235_v11, %v486_v61  ;;  %vm673_vm8 = vcmp.lt.s32.totalorder %v1639_v17, 4  ;;  %v678_v12 = vsel %vm670_vm7, %v657_v58, %v660_v14  ;;  %v686_v21 = vshll.u32 %v646_v37, 8 }
 0x114   :  { %1065 = vcosq.f32 %v489_v31  ;;  %v1660_v60 = vsub.s32 %v594_v39, %v597_v9  ;;  %vm672_vm9 = vcmp.lt.s32.totalorder %v1639_v17, 3  ;;  %v679_v18 = vsel %vm673_vm8, %v666_v5, 920167782 }
 0x115   :  { %1067 = vsinq.f32 %v489_v31  ;;  %v756_v1 = vshrl.u32 %v755_v63, 23  ;;  %vm671_vm10 = vcmp.lt.s32.totalorder %v1639_v17, 2  ;;  %v675_v20 = vsel %vm673_vm8, %v663_v2, 2102212464 }
 0x116   :  { %v600_v16 = vsub.s32 0, %v1660_v60  ;;  %v680_v49 = vsel %vm672_vm9, %v663_v2, %v679_v18  ;;  %v683_v41 = vsel %vm673_vm8, %v669_v0, 1326507024  ;;  %v654_v22 = vshrl.u32 %v1114_v19, %v653_v62 }
 0x117   :  { %v681_v7 = vsel %vm671_vm10, %v678_v12, %v680_v49  ;;  %v682_v4 = vsel %vm670_vm7, %v660_v14, %v663_v2  ;;  %v684_v40 = vsel %vm672_vm9, %v666_v5, %v683_v41  ;;  %v749_v34 = vmul.f32 %v1201_v38, %v1211_v48 }
 0x118   :  { %v992_v30 = vmin.u32 %v600_v16, %v1660_v60  ;;  %v1679_v26 = vmul.u32.u64.low %v686_v21, %v681_v7  ;;  %v1680_v24 = vmul.u32.u64.high %v686_v21, %v681_v7, %v1679_v26  ;;  %vm493_vm11 = vweird.f32 %v1235_v11 }
 0x119   :  { %v674_v39 = vsel %vm670_vm7, %v654_v22, %v657_v58  ;;  %v676_v37 = vsel %vm672_vm9, %v660_v14, %v675_v20  ;;  %v752_v3 = vand.u32 2147483647, %v1209_v47  ;;  %vm496_vm12 = vcmp.lt.s32.totalorder %v495_v33, 2 }
 0x11a   :  { %v602_v43 = vclz %v992_v30  ;;  %vm497_vm13 = vcmp.eq.s32.totalorder %v495_v33, 0  ;;  %v685_v6 = vsel %vm671_vm10, %v682_v4, %v684_v40  ;;  %v999_v62 = vadd.s32 4294967169, %v756_v1 }
 0x11b   :  { %vm500_vm14 = vcmp.eq.s32.totalorder %v495_v33, 2  ;;  %v1693_v38 = vmul.u32.u64.low %v686_v21, %v685_v6  ;;  %v1694_v48 = vmul.u32.u64.high %v686_v21, %v685_v6, %v1693_v38  ;;  %v590_v13 = vadd.s32 %v1602_v15, %v1617_v32 }
 0x11c   :  { %v993_v44 = vadd.s32 4294967294, %v602_v43  ;;  %v677_v10 = vsel %vm671_vm10, %v674_v39, %v676_v37  ;;  %v1701_v52 = vadd.f32 %v749_v34, %v1218_v53  ;;  %v762_v55 = vadd.s32 1, %v999_v62 }
 0x11d   :  { %v696_v56 = vadd.s32 1, %v1680_v24  ;;  %v759_v54 = vand.u32 8388607, %v752_v3  ;;  %v620_v58 = vsub.s32 4, %v1647_v57  ;;  %v693_v53 = vmul.u32 %v686_v21, %v677_v10 }
 0x11e   :  { %v1066_v50 = vpop.eup %1065  ;;  %vm994_vm0 = vcmp.lt.s32.totalorder %v993_v44, 0  ;;  %vm763_vm1 = vcmp.gt.s32.totalorder %v762_v55, 0  ;;  %vm695_vm15 = vc.u32 %v1694_v48, %v1679_v26  ;;  %vm536_vm2 = vcmp.lt.s32.totalorder %v1207_v46, 0 }
 0x11f   :  { %v1068_v42 = vpop.eup %1067  ;;  %v501_v8 = vxor.u32 2147483648, %v1066_v50  ;;  %v605_v61 = vsel %vm994_vm0, 0, %v993_v44  ;;  %v764_v31 = vsel %vm763_vm1, %v762_v55, 0  ;;  %v697_v5 = vsel %vm695_vm15, %v696_v56, %v1680_v24 }
 0x120   :  { %v498_v28 = vxor.u32 2147483648, %v1068_v42  ;;  %v606_v32 = vsub.s32 32, %v605_v61  ;;  %v610_v17 = vsub.s32 4294967266, %v605_v61  ;;  %v607_v59 = vshll.u32 %v1660_v60, %v605_v61 }
 0x121   :  { %v502_v15 = vsel %vm500_vm14, %v501_v8, %v1068_v42  ;;  %v698_v12 = vadd.s32 %v697_v5, %v693_v53  ;;  %v766_v16 = vand.u32 31, %v764_v31  ;;  %v621_v33 = vsel %vm536_vm2, %v620_v58, %v1647_v57 }
 0x122   :  { %v499_v14 = vsel %vm497_vm13, %v1066_v50, %v498_v28  ;;  %v608_v63 = vshrl.u32 %v590_v13, %v606_v32  ;;  %v611_v2 = vadd.s32 127, %v610_v17  ;;  %v760_v49 = vor.u32 8388608, %v759_v54 }
 0x123   :  { %v503_v9 = vsel %vm496_vm12, %v499_v14, %v502_v15  ;;  %v699_v18 = vadd.s32 536870912, %v698_v12  ;;  %v767_v1 = vsub.s32 32, %v766_v16  ;;  %v765_v11 = vshrl.u32 %v764_v31, 5 }
 0x124   :  { %v504_v0 = vsel %vm493_vm11, nan, %v503_v9  ;;  %v609_v60 = vor.u32 %v608_v63, %v607_v59  ;;  %v612_v21 = vshll.u32 %v611_v2, 23  ;;  %v859_v41 = vand.u32 2139095040, %v1701_v52 }
 0x125   :  { %506 = vst [vmem:[%s1859_s3 + $0x18] sm:$0xff] %v504_v0  ;;  %v1724_v22 = vshrl.u32 %v699_v18, 30  ;;  %v770_v7 = vshrl.u32 %v1115_v23, %v767_v1  ;;  %v773_v4 = vshrl.u32 %v1116_v25, %v767_v1  ;;  %v776_v24 = vshrl.u32 %v1117_v27, %v767_v1 }
 0x126   :  { %v613_v20 = vor.u32 4788187, %v612_v21  ;;  %v616_v30 = vcvt.s32.f32 %v609_v60  ;;  %v778_v34 = vshll.u32 %v1117_v27, %v766_v16  ;;  %v779_v57 = vshrl.u32 %v1118_v29, %v767_v1 }
 0x127   :  { %v701_v43 = vshll.u32 %v1724_v22, 30  ;;  %v769_v39 = vshll.u32 %v1114_v19, %v766_v16  ;;  %v772_v37 = vshll.u32 %v1115_v23, %v766_v16  ;;  %v775_v6 = vshll.u32 %v1116_v25, %v766_v16 }
 0x128   :  { %v614_v40 = vand.u32 2147483647, %v613_v20  ;;  %vm1737_vm3 = vcmp.le.f32.partialorder %v534_v35, 0.7853982  ;;  %v780_v38 = vor.u32 %v779_v57, %v778_v34  ;;  %v782_v50 = vshrl.u32 %v1119_v36, %v767_v1 }
 0x129   :  { %v1742_v13 = vsub.s32 %v698_v12, %v701_v43  ;;  %v771_v10 = vor.u32 %v770_v7, %v769_v39  ;;  %v774_v55 = vor.u32 %v773_v4, %v772_v37  ;;  %v777_v42 = vor.u32 %v776_v24, %v775_v6 }
 0x12a   :  { %v617_v44 = vmul.f32 %v616_v30, %v614_v40  ;;  %v623_v56 = vsel %vm1737_vm3, 0, %v621_v33  ;;  %v781_v54 = vshll.u32 %v1118_v29, %v766_v16  ;;  %v860_v28 = vshrl.u32 %v859_v41, 23 }
 0x12b   :  { %v704_v35 = vsub.s32 0, %v1742_v13  ;;  %vm784_vm4 = vcmp.lt.s32.totalorder %v765_v11, 1  ;;  %vm787_vm5 = vcmp.lt.s32.totalorder %v765_v11, 4  ;;  %v800_v61 = vshll.u32 %v760_v49, 8 }
 0x12c   :  { %v618_v8 = vxor.u32 2147483648, %v617_v44  ;;  %v783_v15 = vor.u32 %v782_v50, %v781_v54  ;;  %vm786_vm6 = vcmp.lt.s32.totalorder %v765_v11, 3  ;;  %v793_v32 = vsel %vm787_vm5, %v780_v38, 920167782 }
 0x12d   :  { %v996_v53 = vmin.u32 %v704_v35, %v1742_v13  ;;  %v789_v14 = vsel %vm787_vm5, %v777_v42, 2102212464  ;;  %v792_v59 = vsel %vm784_vm4, %v771_v10, %v774_v55  ;;  %v768_v31 = vshrl.u32 %v1114_v19, %v767_v1 }
 0x12e   :  { %v619_v58 = vsel %vm536_vm2, %v618_v8, %v617_v44  ;;  %v794_v9 = vsel %vm786_vm6, %v777_v42, %v793_v32  ;;  %v1003_v63 = vadd.s32 4294967169, %v860_v28  ;;  %vm785_vm7 = vcmp.lt.s32.totalorder %v765_v11, 2 }
 0x12f   :  { %v622_v17 = vsel %vm1737_vm3, %v1207_v46, %v619_v58  ;;  %v706_v2 = vclz %v996_v53  ;;  %v796_v5 = vsel %vm784_vm4, %v774_v55, %v777_v42  ;;  %v788_v0 = vsel %vm784_vm4, %v768_v31, %v771_v10 }
 0x130   :  { %1069 = vcosq.f32 %v622_v17  ;;  %v790_v12 = vsel %vm786_vm6, %v774_v55, %v789_v14  ;;  %v795_v16 = vsel %vm785_vm7, %v792_v59, %v794_v9  ;;  %v797_v60 = vsel %vm787_vm5, %v783_v15, 1326507024 }
 0x131   :  { %1071 = vsinq.f32 %v622_v17  ;;  %v997_v21 = vadd.s32 4294967294, %v706_v2  ;;  %v798_v33 = vsel %vm786_vm6, %v780_v38, %v797_v60  ;;  %v627_v20 = vadd.s32 3, %v623_v56 }
 0x132   :  { %v1764_v18 = vmul.u32.u64.low %v800_v61, %v795_v16  ;;  %v1765_v1 = vmul.u32.u64.high %v800_v61, %v795_v16, %v1764_v18  ;;  %v799_v49 = vsel %vm785_vm7, %v796_v5, %v798_v33  ;;  %v866_v41 = vadd.s32 1, %v1003_v63 }
 0x133   :  { %vm1770_vm8 = vcmp.le.f32.partialorder %v638_v45, 0.7853982  ;;  %vm998_vm9 = vcmp.lt.s32.totalorder %v997_v21, 0  ;;  %v791_v7 = vsel %vm785_vm7, %v788_v0, %v790_v12  ;;  %v724_v24 = vsub.s32 4, %v1724_v22 }
 0x134   :  { %v1774_v4 = vmul.u32.u64.low %v800_v61, %v799_v49  ;;  %v1775_v40 = vmul.u32.u64.high %v800_v61, %v799_v49, %v1774_v4  ;;  %v709_v11 = vsel %vm998_vm9, 0, %v997_v21  ;;  %v856_v34 = vand.u32 2147483647, %v1701_v52 }
 0x135   :  { %vm867_vm10 = vcmp.gt.s32.totalorder %v866_v41, 0  ;;  %vm626_vm11 = vweird.f32 %v1207_v46  ;;  %v694_v57 = vadd.s32 %v1679_v26, %v1694_v48  ;;  %v710_v45 = vsub.s32 32, %v709_v11 }
 0x136   :  { %v714_v43 = vsub.s32 4294967266, %v709_v11  ;;  %v810_v39 = vadd.s32 1, %v1765_v1  ;;  %v628_v37 = vand.u32 3, %v627_v20  ;;  %vm640_vm12 = vcmp.lt.s32.totalorder %v1536_v51, 0 }
 0x137   :  { %v807_v6 = vmul.u32 %v800_v61, %v791_v7  ;;  %v868_v62 = vsel %vm867_vm10, %v866_v41, 0  ;;  %v711_v44 = vshll.u32 %v1742_v13, %v709_v11  ;;  %v712_v38 = vshrl.u32 %v694_v57, %v710_v45 }
 0x138   :  { %v715_v50 = vadd.s32 127, %v714_v43  ;;  %vm809_vm13 = vc.u32 %v1775_v40, %v1764_v18  ;;  %v725_v26 = vsel %vm640_vm12, %v724_v24, %v1724_v22  ;;  %v863_v55 = vand.u32 8388607, %v856_v34 }
 0x139   :  { %v811_v48 = vsel %vm809_vm13, %v810_v39, %v1765_v1  ;;  %v870_v42 = vand.u32 31, %v868_v62  ;;  %v713_v54 = vor.u32 %v712_v38, %v711_v44  ;;  %vm629_vm14 = vcmp.lt.s32.totalorder %v628_v37, 2 }
 0x13a   :  { %v1070_v10 = vpop.eup %1069  ;;  %v716_v13 = vshll.u32 %v715_v50, 23  ;;  %v812_v28 = vadd.s32 %v811_v48, %v807_v6  ;;  %vm633_vm0 = vcmp.eq.s32.totalorder %v628_v37, 2  ;;  %vm630_vm1 = vcmp.eq.s32.totalorder %v628_v37, 0 }
 0x13b   :  { %v1072_v8 = vpop.eup %1071  ;;  %v634_v56 = vxor.u32 2147483648, %v1070_v10  ;;  %v871_v61 = vsub.s32 32, %v870_v42  ;;  %v727_v17 = vsel %vm1770_vm8, 0, %v725_v26  ;;  %v864_v53 = vor.u32 8388608, %v863_v55 }
 0x13c   :  { %v631_v35 = vxor.u32 2147483648, %v1072_v8  ;;  %v717_v15 = vor.u32 4788187, %v716_v13  ;;  %v813_v32 = vadd.s32 536870912, %v812_v28  ;;  %v869_v14 = vshrl.u32 %v868_v62, 5 }
 0x13d   :  { %v635_v58 = vsel %vm633_vm0, %v634_v56, %v1072_v8  ;;  %v720_v9 = vcvt.s32.f32 %v713_v54  ;;  %v874_v5 = vshrl.u32 %v1115_v23, %v871_v61  ;;  %v877_v0 = vshrl.u32 %v1116_v25, %v871_v61 }
 0x13e   :  { %v632_v22 = vsel %vm630_vm1, %v1070_v10, %v631_v35  ;;  %v718_v31 = vand.u32 2147483647, %v717_v15  ;;  %v1795_v63 = vshrl.u32 %v813_v32, 30  ;;  %v880_v12 = vshrl.u32 %v1117_v27, %v871_v61 }
 0x13f   :  { %v636_v59 = vsel %vm629_vm14, %v632_v22, %v635_v58  ;;  %v873_v21 = vshll.u32 %v1114_v19, %v870_v42  ;;  %v879_v33 = vshll.u32 %v1116_v25, %v870_v42  ;;  %v876_v46 = vshll.u32 %v1115_v23, %v870_v42 }
 0x140   :  { %v637_v2 = vsel %vm626_vm11, nan, %v636_v59  ;;  %v721_v16 = vmul.f32 %v720_v9, %v718_v31  ;;  %v815_v60 = vshll.u32 %v1795_v63, 30  ;;  %v882_v1 = vshll.u32 %v1117_v27, %v870_v42 }
 0x141   :  { %742 = vst [vmem:[%s1859_s3 + $0x20] sm:$0xff] %v637_v2  ;;  %v883_v20 = vshrl.u32 %v1118_v29, %v871_v61  ;;  %v886_v49 = vshrl.u32 %v1119_v36, %v871_v61  ;;  %v881_v4 = vor.u32 %v880_v12, %v879_v33  ;;  %v875_v11 = vor.u32 %v874_v5, %v873_v21 }
 0x142   :  { %v722_v41 = vxor.u32 2147483648, %v721_v16  ;;  %v816_v7 = vsub.s32 %v812_v28, %v815_v60  ;;  %v878_v24 = vor.u32 %v877_v0, %v876_v46  ;;  %v885_v45 = vshll.u32 %v1118_v29, %v870_v42 }
 0x143   :  { %v884_v57 = vor.u32 %v883_v20, %v882_v1  ;;  %v731_v25 = vadd.s32 3, %v727_v17  ;;  %vm891_vm15 = vcmp.lt.s32.totalorder %v869_v14, 4  ;;  %v904_v36 = vshll.u32 %v864_v53, 8 }
 0x144   :  { %v723_v43 = vsel %vm640_vm12, %v722_v41, %v721_v16  ;;  %v818_v39 = vsub.s32 0, %v816_v7  ;;  %v887_v27 = vor.u32 %v886_v49, %v885_v45  ;;  %vm888_vm2 = vcmp.lt.s32.totalorder %v869_v14, 1 }
 0x145   :  { %v726_v23 = vsel %vm1770_vm8, %v1536_v51, %v723_v43  ;;  %v893_v6 = vsel %vm891_vm15, %v881_v4, 2102212464  ;;  %v872_v29 = vshrl.u32 %v1114_v19, %v871_v61  ;;  %v896_v62 = vsel %vm888_vm2, %v875_v11, %v878_v24 }
 0x146   :  { %1073 = vcosq.f32 %v726_v23  ;;  %v1000_v37 = vmin.u32 %v818_v39, %v816_v7  ;;  %v897_v44 = vsel %vm891_vm15, %v884_v57, 920167782  ;;  %vm889_vm3 = vcmp.lt.s32.totalorder %v869_v14, 2 }
 0x147   :  { %1075 = vsinq.f32 %v726_v23  ;;  %vm890_vm4 = vcmp.lt.s32.totalorder %v869_v14, 3  ;;  %v900_v50 = vsel %vm888_vm2, %v878_v24, %v881_v4  ;;  %v892_v30 = vsel %vm888_vm2, %v872_v29, %v875_v11 }
 0x148   :  { %v820_v38 = vclz %v1000_v37  ;;  %v894_v10 = vsel %vm890_vm4, %v878_v24, %v893_v6  ;;  %v898_v26 = vsel %vm890_vm4, %v881_v4, %v897_v44  ;;  %v901_v48 = vsel %vm891_vm15, %v887_v27, 1326507024 }
 0x149   :  { %v899_v42 = vsel %vm889_vm3, %v896_v62, %v898_v26  ;;  %v902_v8 = vsel %vm890_vm4, %v884_v57, %v901_v48  ;;  %v895_v19 = vsel %vm889_vm3, %v892_v30, %v894_v10  ;;  %v732_v61 = vand.u32 3, %v731_v25 }
 0x14a   :  { %v1001_v55 = vadd.s32 4294967294, %v820_v38  ;;  %v903_v56 = vsel %vm889_vm3, %v900_v50, %v902_v8  ;;  %v1822_v54 = vmul.u32.u64.low %v904_v36, %v899_v42  ;;  %v1823_v13 = vmul.u32.u64.high %v904_v36, %v899_v42, %v1822_v54 }
 0x14b   :  { %v1825_v28 = vmul.u32.u64.low %v904_v36, %v903_v56  ;;  %v1826_v35 = vmul.u32.u64.high %v904_v36, %v903_v56, %v1825_v28  ;;  %v808_v15 = vadd.s32 %v1764_v18, %v1775_v40  ;;  %v911_v17 = vmul.u32 %v904_v36, %v895_v19 }
 0x14c   :  { %vm1002_vm5 = vcmp.lt.s32.totalorder %v1001_v55, 0  ;;  %v914_v53 = vadd.s32 1, %v1823_v13  ;;  %vm737_vm7 = vcmp.eq.s32.totalorder %v732_v61, 2  ;;  %vm734_vm8 = vcmp.eq.s32.totalorder %v732_v61, 0 }
 0x14d   :  { %v823_v58 = vsel %vm1002_vm5, 0, %v1001_v55  ;;  %vm913_vm6 = vc.u32 %v1826_v35, %v1822_v54  ;;  %vm733_vm9 = vcmp.lt.s32.totalorder %v732_v61, 2  ;;  %vm730_vm10 = vweird.f32 %v1536_v51 }
 0x14e   :  { %v824_v32 = vsub.s32 32, %v823_v58  ;;  %v828_v22 = vsub.s32 4294967266, %v823_v58  ;;  %v825_v59 = vshll.u32 %v816_v7, %v823_v58  ;;  %v915_v0 = vsel %vm913_vm6, %v914_v53, %v1823_v13 }
 0x14f   :  { %v916_v18 = vadd.s32 %v915_v0, %v911_v17  ;;  %v838_v11 = vsub.s32 4, %v1795_v63  ;;  %vm754_vm11 = vcmp.lt.s32.totalorder %v1209_v47, 0  ;;  %vm753_vm12 = vcmp.le.f32.partialorder %v752_v3, 0.7853982 }
 0x150   :  { %v1074_v14 = vpop.eup %1073  ;;  %v826_v31 = vshrl.u32 %v808_v15, %v824_v32  ;;  %v829_v9 = vadd.s32 127, %v828_v22  ;;  %v912_v44 = vadd.s32 %v1822_v54, %v1826_v35  ;;  %vm844_vm15 = vweird.f32 %v1209_v47 }
 0x151   :  { %v1076_v2 = vpop.eup %1075  ;;  %v738_v5 = vxor.u32 2147483648, %v1074_v14  ;;  %v917_v46 = vadd.s32 536870912, %v916_v18  ;;  %v839_v43 = vsel %vm754_vm11, %v838_v11, %v1795_v63  ;;  %vm858_vm2 = vcmp.lt.s32.totalorder %v1701_v52, 0 }
 0x152   :  { %v735_v12 = vxor.u32 2147483648, %v1076_v2  ;;  %v827_v16 = vor.u32 %v826_v31, %v825_v59  ;;  %v830_v60 = vshll.u32 %v829_v9, 23  ;;  %v841_v27 = vsel %vm753_vm12, 0, %v839_v43 }
 0x153   :  { %v739_v40 = vsel %vm737_vm7, %v738_v5, %v1076_v2  ;;  %v918_v7 = vshrl.u32 %v917_v46, 30  ;;  %v845_v37 = vadd.s32 3, %v841_v27  ;;  %vm857_vm3 = vcmp.le.f32.partialorder %v856_v34, 0.7853982 }
 0x154   :  { %v736_v21 = vsel %vm734_vm8, %v1074_v14, %v735_v12  ;;  %v831_v33 = vor.u32 4788187, %v830_v60  ;;  %v834_v41 = vcvt.s32.f32 %v827_v16  ;;  %vm948_vm7 = vweird.f32 %v1701_v52 }
 0x155   :  { %v740_v1 = vsel %vm733_vm9, %v736_v21, %v739_v40  ;;  %v919_v24 = vshll.u32 %v918_v7, 30  ;;  %v846_v62 = vand.u32 3, %v845_v37  ;;  %v942_v15 = vsub.s32 4, %v918_v7 }
 0x156   :  { %v741_v20 = vsel %vm730_vm10, nan, %v740_v1  ;;  %v832_v49 = vand.u32 2147483647, %v831_v33 }
 0x157   :  { %743 = vst [vmem:[%s1859_s3 + $0x28] sm:$0xff] %v741_v20  ;;  %v920_v45 = vsub.s32 %v916_v18, %v919_v24  ;;  %vm851_vm14 = vcmp.eq.s32.totalorder %v846_v62, 2  ;;  %vm848_vm0 = vcmp.eq.s32.totalorder %v846_v62, 0  ;;  %vm847_vm1 = vcmp.lt.s32.totalorder %v846_v62, 2 }
 0x158   :  { %v835_v4 = vmul.f32 %v834_v41, %v832_v49  ;;  %v943_v17 = vsel %vm858_vm2, %v942_v15, %v918_v7 }
 0x159   :  { %v922_v25 = vsub.s32 0, %v920_v45  ;;  %v945_v53 = vsel %vm857_vm3, 0, %v943_v17 }
 0x15a   :  { %v836_v57 = vxor.u32 2147483648, %v835_v4  ;;  %v949_v14 = vadd.s32 3, %v945_v53 }
 0x15b   :  { %v1004_v23 = vmin.u32 %v922_v25, %v920_v45 }
 0x15c   :  { %v837_v51 = vsel %vm754_vm11, %v836_v57, %v835_v4  ;;  %v950_v59 = vand.u32 3, %v949_v14 }
 0x15d   :  { %v840_v39 = vsel %vm753_vm12, %v1209_v47, %v837_v51  ;;  %v924_v36 = vclz %v1004_v23 }
 0x15e   :  { %1077 = vcosq.f32 %v840_v39  ;;  %vm955_vm4 = vcmp.eq.s32.totalorder %v950_v59, 2  ;;  %vm952_vm5 = vcmp.eq.s32.totalorder %v950_v59, 0  ;;  %vm951_vm6 = vcmp.lt.s32.totalorder %v950_v59, 2 }
 0x15f   :  { %1079 = vsinq.f32 %v840_v39  ;;  %v1005_v6 = vadd.s32 4294967294, %v924_v36 }
 0x161   :  { %vm1006_vm13 = vcmp.lt.s32.totalorder %v1005_v6, 0 }
 0x162   :  { %v927_v29 = vsel %vm1006_vm13, 0, %v1005_v6 }
 0x163   :  { %v928_v38 = vsub.s32 32, %v927_v29  ;;  %v932_v3 = vsub.s32 4294967266, %v927_v29  ;;  %v929_v30 = vshll.u32 %v920_v45, %v927_v29 }
 0x165   :  { %v930_v63 = vshrl.u32 %v912_v44, %v928_v38  ;;  %v933_v10 = vadd.s32 127, %v932_v3 }
 0x167   :  { %v931_v42 = vor.u32 %v930_v63, %v929_v30  ;;  %v934_v8 = vshll.u32 %v933_v10, 23 }
 0x168   :  { %v1078_v50 = vpop.eup %1077 }
 0x169   :  { %v1080_v26 = vpop.eup %1079  ;;  %v852_v48 = vxor.u32 2147483648, %v1078_v50  ;;  %v935_v19 = vor.u32 4788187, %v934_v8  ;;  %v938_v61 = vcvt.s32.f32 %v931_v42 }
 0x16a   :  { %v849_v55 = vxor.u32 2147483648, %v1080_v26 }
 0x16b   :  { %v853_v56 = vsel %vm851_vm14, %v852_v48, %v1080_v26  ;;  %v936_v35 = vand.u32 2147483647, %v935_v19 }
 0x16c   :  { %v850_v13 = vsel %vm848_vm0, %v1078_v50, %v849_v55 }
 0x16d   :  { %v854_v54 = vsel %vm847_vm1, %v850_v13, %v853_v56  ;;  %v939_v58 = vmul.f32 %v938_v61, %v936_v35 }
 0x16e   :  { %v855_v28 = vsel %vm844_vm15, nan, %v854_v54 }
 0x16f   :  { %960 = vst [vmem:[%s1859_s3 + $0x30] sm:$0xff] %v855_v28  ;;  %v940_v32 = vxor.u32 2147483648, %v939_v58 }
 0x171   :  { %v941_v22 = vsel %vm858_vm2, %v940_v32, %v939_v58 }
 0x172   :  { %v944_v47 = vsel %vm857_vm3, %v1701_v52, %v941_v22 }
 0x173   :  { %1081 = vcosq.f32 %v944_v47 }
 0x174   :  { %1083 = vsinq.f32 %v944_v47 }
 0x17d   :  { %v1082_v31 = vpop.eup %1081 }
 0x17e   :  { %v1084_v9 = vpop.eup %1083  ;;  %v956_v2 = vxor.u32 2147483648, %v1082_v31 }
 0x17f   :  { %v953_v5 = vxor.u32 2147483648, %v1084_v9 }
 0x180   :  { %v957_v0 = vsel %vm955_vm4, %v956_v2, %v1084_v9 }
 0x181   :  { %v954_v12 = vsel %vm952_vm5, %v1082_v31, %v953_v5 }
 0x182   :  { %v958_v34 = vsel %vm951_vm6, %v954_v12, %v957_v0 }
 0x183   :  { %v959_v16 = vsel %vm948_vm7, nan, %v958_v34 }
 0x184   :  { %961 = vst [vmem:[%s1859_s3 + $0x38] sm:$0xff] %v959_v16 }
 0x185   :  { %970 = vsyncpa [#allocation3], 1 }

</bundles_post_ra>
